<compile_context>
chip_gen: v7x
topology: tpu7x:2x2x1
jax: 0.10.0
libtpu: 0.0.40
codegen_flags: <defaults>
</compile_context>

<pallas_src>
import numpy as np
import jax
import jax.numpy as jnp
from jax.experimental import pallas as pl
from jax.experimental.pallas import tpu as pltpu

HEAD_W = 128  # fused head output lane width (loc 4A | score 2A | fg A | pad)


# ----------------------- anchors (numpy, standard reference) -----------------
def generate_anchor_base(base_size=16, ratios=(0.5, 1, 2), anchor_scales=(8, 16, 32)):
    anchor_base = np.zeros((len(ratios) * len(anchor_scales), 4), dtype=np.float32)
    for i in range(len(ratios)):
        for j in range(len(anchor_scales)):
            h = base_size * anchor_scales[j] * np.sqrt(ratios[i])
            w = base_size * anchor_scales[j] * np.sqrt(1.0 / ratios[i])
            idx = i * len(anchor_scales) + j
            anchor_base[idx, 0] = -w / 2.0
            anchor_base[idx, 1] = -h / 2.0
            anchor_base[idx, 2] = w / 2.0
            anchor_base[idx, 3] = h / 2.0
    return anchor_base


def _enumerate_shifted_anchor(anchor_base, feat_stride, height, width):
    shift_x = np.arange(0, width * feat_stride, feat_stride)
    shift_y = np.arange(0, height * feat_stride, feat_stride)
    shift_x, shift_y = np.meshgrid(shift_x, shift_y)
    shift = np.stack((shift_x.ravel(), shift_y.ravel(),
                      shift_x.ravel(), shift_y.ravel()), axis=1)
    A = anchor_base.shape[0]
    K = shift.shape[0]
    anchor = anchor_base.reshape((1, A, 4)) + shift.reshape((K, 1, 4))
    return anchor.reshape((K * A, 4)).astype(np.float32)


# ----------------------- Pallas kernel 1: fused RPN head ---------------------
def _make_rpn_head_kernel(th, w, c_in, c_mid, n_anchor):
    fg_lo = 6 * n_anchor
    fg_hi = 7 * n_anchor
    m = th * w

    def kernel(x_ref, w1_ref, b1_ref, wh_ref, bh_ref, out_ref):
        # x_ref: (th+2, w+2, c_in) bf16 NHWC tile with 1-pixel conv halo.
        xb = x_ref[...]
        # 3x3 conv as 9 shifted (m, c_in) @ (c_in, c_mid) matmuls, f32 accum.
        acc = jnp.zeros((m, c_mid), jnp.float32)
        for k in range(9):
            ky, kx = divmod(k, 3)
            patch = xb[ky:ky + th, kx:kx + w, :].reshape(m, c_in)
            acc = acc + jnp.dot(patch, w1_ref[k],
                                preferred_element_type=jnp.float32)
        h = jnp.maximum(acc + b1_ref[...], 0.0).astype(jnp.bfloat16)
        # Single fused head matmul: lanes = [loc 4A | score 2A | fg-logit A | pad].
        logits = jnp.dot(h, wh_ref[...],
                         preferred_element_type=jnp.float32) + bh_ref[...]
        # fg prob = sigmoid(s1 - s0) (dmat folded into wh/bh at init time).
        fg = pl.reciprocal(1.0 + jnp.exp(-logits), approx=True)
        lane = jax.lax.broadcasted_iota(jnp.int32, (m, HEAD_W), 1)
        out_ref[...] = jnp.where((lane >= fg_lo) & (lane < fg_hi), fg, logits)

    return kernel


def rpn_head(x_blk, w1m, b1, wh, bh, th, w, c_in, c_mid, n_anchor):
    g = x_blk.shape[0]
    m_blk = th * w
    kernel = _make_rpn_head_kernel(th, w, c_in, c_mid, n_anchor)
    # TODO(synk): on v7x, mark the constant-index weight specs with
    # pipeline_mode=pl.Buffered(1) to avoid double-buffering large weights.
    return pl.pallas_call(
        kernel,
        out_shape=jax.ShapeDtypeStruct((g * m_blk, HEAD_W), jnp.float32),
        grid_spec=pltpu.PrefetchScalarGridSpec(
            num_scalar_prefetch=0, grid=(g,),
            in_specs=[
                pl.BlockSpec((None, th + 2, w + 2, c_in), lambda i: (i, 0, 0, 0)),
                pl.BlockSpec((9, c_in, c_mid), lambda i: (0, 0, 0)),
                pl.BlockSpec((1, c_mid), lambda i: (0, 0)),
                pl.BlockSpec((c_mid, HEAD_W), lambda i: (0, 0)),
                pl.BlockSpec((1, HEAD_W), lambda i: (0, 0)),
            ],
            out_specs=pl.BlockSpec((m_blk, HEAD_W), lambda i: (i, 0))),
        compiler_params=pltpu.CompilerParams(
            dimension_semantics=("parallel",),
            vmem_limit_bytes=48 * 1024 * 1024),
    )(x_blk, w1m, b1, wh, bh)


# ----------------- Pallas kernel 2: loc2bbox decode + clip + min-size --------
def _make_decode_kernel(img_w, img_h, min_size):
    def kernel(anchor_ref, loc_ref, score_ref, roi_ref, msc_ref):
        # Each component is a lane/sublane-dense (R, 128) plane.
        ax1 = anchor_ref[0]
        ay1 = anchor_ref[1]
        ax2 = anchor_ref[2]
        ay2 = anchor_ref[3]
        dx = loc_ref[0]
        dy = loc_ref[1]
        dw = loc_ref[2]
        dh = loc_ref[3]
        w = ax2 - ax1
        h = ay2 - ay1
        cx = ax1 + 0.5 * w
        cy = ay1 + 0.5 * h
        ncx = dx * w + cx
        ncy = dy * h + cy
        nw = jnp.exp(dw) * w
        nh = jnp.exp(dh) * h
        x1 = jnp.clip(ncx - 0.5 * nw, 0.0, img_w)
        y1 = jnp.clip(ncy - 0.5 * nh, 0.0, img_h)
        x2 = jnp.clip(ncx + 0.5 * nw, 0.0, img_w)
        y2 = jnp.clip(ncy + 0.5 * nh, 0.0, img_h)
        roi_ref[0] = x1
        roi_ref[1] = y1
        roi_ref[2] = x2
        roi_ref[3] = y2
        valid = ((x2 - x1 + 1.0) >= min_size) & ((y2 - y1 + 1.0) >= min_size)
        msc_ref[0] = jnp.where(valid, score_ref[0], -jnp.inf)

    return kernel


def decode_proposals(anchor_planes, loc_planes, fg_planes, img_size, min_size):
    n, _, r, _ = loc_planes.shape
    kernel = _make_decode_kernel(float(img_size[1]), float(img_size[0]),
                                 float(min_size))
    roi_planes, msc_planes = pl.pallas_call(
        kernel,
        out_shape=(jax.ShapeDtypeStruct((n, 4, r, 128), jnp.float32),
                   jax.ShapeDtypeStruct((n, 1, r, 128), jnp.float32)),
        grid_spec=pltpu.PrefetchScalarGridSpec(
            num_scalar_prefetch=0, grid=(n,),
            in_specs=[pl.BlockSpec((4, r, 128), lambda i: (0, 0, 0)),
                      pl.BlockSpec((None, 4, r, 128), lambda i: (i, 0, 0, 0)),
                      pl.BlockSpec((None, 1, r, 128), lambda i: (i, 0, 0, 0))],
            out_specs=[pl.BlockSpec((None, 4, r, 128), lambda i: (i, 0, 0, 0)),
                       pl.BlockSpec((None, 1, r, 128), lambda i: (i, 0, 0, 0))]),
        compiler_params=pltpu.CompilerParams(
            dimension_semantics=("parallel",),
            vmem_limit_bytes=48 * 1024 * 1024),
    )(anchor_planes, loc_planes, fg_planes)
    return roi_planes, msc_planes


# ----------------- plain-JAX glue: top-k + NMS + post-NMS selection ----------
def _nms_select_impl(roi, score, nms_thresh, n_pre_nms, n_post_nms):
    # roi: (K, 4) x1,y1,x2,y2 ; score: (K,), -inf marks min-size / padded boxes.
    # TODO(synk): torchvision.ops.nms / dynamic torch.where keep and the
    # np.random.choice padding have no clean Pallas equivalent; fixed-shape
    # JAX top-k + masked suppression loop + deterministic cyclic pad instead.
    k = roi.shape[0]
    n_pre = min(n_pre_nms, k) if n_pre_nms > 0 else k
    s, order = jax.lax.top_k(score, n_pre)        # reference n_pre_nms truncation
    boxes = roi[order]
    x1, y1, x2, y2 = boxes[:, 0], boxes[:, 1], boxes[:, 2], boxes[:, 3]
    areas = (x2 - x1) * (y2 - y1)
    xx1 = jnp.maximum(x1[:, None], x1[None, :])
    yy1 = jnp.maximum(y1[:, None], y1[None, :])
    xx2 = jnp.minimum(x2[:, None], x2[None, :])
    yy2 = jnp.minimum(y2[:, None], y2[None, :])
    inter = jnp.clip(xx2 - xx1, 0.0) * jnp.clip(yy2 - yy1, 0.0)
    iou = inter / (areas[:, None] + areas[None, :] - inter + 1e-9)
    valid = jnp.isfinite(s)
    idxs = jnp.arange(n_pre)

    def body(i, keep):
        sup = (iou[i] > nms_thresh) & (idxs > i) & keep[i]
        return keep & jnp.logical_not(sup)

    keep = jax.lax.fori_loop(0, n_pre, body, valid)
    kept_first = jnp.argsort((~keep).astype(jnp.int32), stable=True)
    num_kept = jnp.maximum(jnp.sum(keep.astype(jnp.int32)), 1)
    sel = jnp.arange(n_post_nms)
    sel = jnp.where(sel < num_kept, sel, sel % num_kept)
    return boxes[kept_first[sel]]


_nms_select = jax.jit(_nms_select_impl, static_argnums=(2, 3, 4))


# ----------------------------- RPN forward -----------------------------------
def rpn_forward(x, params, img_size, scale=1.0, mode="training",
                feat_stride=16, anchor_base=None, row_tile=8):
    n, c_in, h, w = x.shape
    c_mid = params["b1"].shape[1]
    a = params["n_anchor"]

    # --- conv input prep: NCHW -> NHWC bf16, conv pad=1, overlapping row tiles
    th = min(row_tile, h)
    n_hblk = -(-h // th)
    hp = n_hblk * th
    x_nhwc = jnp.transpose(x, (0, 2, 3, 1)).astype(jnp.bfloat16)
    x_pad = jnp.pad(x_nhwc, ((0, 0), (1, 1 + hp - h), (1, 1), (0, 0)))
    # (n, n_hblk, th+2, w+2, c_in): each row-block carries its 1-row halo.
    x_blk = jnp.stack([x_pad[:, b * th: b * th + th + 2] for b in range(n_hblk)],
                      axis=1).reshape(n * n_hblk, th + 2, w + 2, c_in)

    out_flat = rpn_head(x_blk, params["w1m"], params["b1"], params["wh"],
                        params["bh"], th, w, c_in, c_mid, a)
    out4 = out_flat.reshape(n, hp, w, HEAD_W)[:, :h]   # drop padded rows
    a4, a2 = 4 * a, 2 * a
    k = h * w * a
    rpn_locs = out4[..., :a4].reshape(n, k, 4)          # == permute(0,2,3,1).view(n,-1,4)
    rpn_scores = out4[..., a4:a4 + a2].reshape(n, k, 2)  # == permute(0,2,3,1).view(n,-1,2)
    rpn_fg = out4[..., a4 + a2:a4 + a2 + a].reshape(n, k)  # softmax(...)[..., 1]

    # --- channel-major, lane-dense planes for the decode kernel
    anchor_np = _enumerate_shifted_anchor(np.array(anchor_base), feat_stride, h, w)
    kpad = ((k + 1023) // 1024) * 1024
    r = kpad // 128
    anchor_planes = jnp.asarray(
        np.pad(anchor_np, ((0, kpad - k), (0, 0))).T.reshape(4, r, 128))
    loc_planes = jnp.pad(jnp.transpose(rpn_locs, (0, 2, 1)),
                         ((0, 0), (0, 0), (0, kpad - k))).reshape(n, 4, r, 128)
    fg_planes = jnp.pad(rpn_fg, ((0, 0), (0, kpad - k)),
                        constant_values=-jnp.inf).reshape(n, 1, r, 128)

    min_size = 16 * scale
    roi_planes, msc_planes = decode_proposals(anchor_planes, loc_planes,
                                              fg_planes, img_size, min_size)
    rois_dec = jnp.transpose(roi_planes.reshape(n, 4, kpad), (0, 2, 1))[:, :k]
    masked_scores = msc_planes.reshape(n, kpad)[:, :k]

    if mode == "training":
        n_pre_nms, n_post_nms = 12000, 600
    else:
        n_pre_nms, n_post_nms = 3000, 300
    rois, roi_indices = [], []
    for i in range(n):
        rsel = _nms_select(rois_dec[i], masked_scores[i], 0.7,
                           n_pre_nms, n_post_nms)
        rois.append(rsel[None])
        roi_indices.append(jnp.full((1, n_post_nms), float(i), dtype=x.dtype))
    rois = jnp.concatenate(rois, axis=0).astype(x.dtype)
    roi_indices = jnp.concatenate(roi_indices, axis=0)
    anchor_out = jnp.asarray(anchor_np)[None].astype(jnp.float32)
    return rpn_locs, rpn_scores, rois, roi_indices, anchor_out


# ----------------------------- parameter init --------------------------------
def init_params(key, in_channels, mid_channels, n_anchor):
    assert 7 * n_anchor <= HEAD_W
    k1, k2, k3 = jax.random.split(key, 3)
    std = 0.01
    w1 = jax.random.normal(k1, (mid_channels, in_channels, 3, 3), jnp.float32) * std
    wl = jax.random.normal(k2, (n_anchor * 4, mid_channels, 1, 1), jnp.float32) * std
    ws = jax.random.normal(k3, (n_anchor * 2, mid_channels, 1, 1), jnp.float32) * std
    b1 = jnp.zeros((1, mid_channels), jnp.float32)
    bl = jnp.zeros((n_anchor * 4,), jnp.float32)
    bs = jnp.zeros((n_anchor * 2,), jnp.float32)
    # conv1 (Cmid, Cin, 3, 3) -> (ky*3+kx, Cin, Cmid), bf16 for the MXU.
    w1m = jnp.transpose(w1, (2, 3, 1, 0)).reshape(9, in_channels,
                                                  mid_channels).astype(jnp.bfloat16)
    wlm = wl.reshape(n_anchor * 4, mid_channels).T     # (Cmid, 4A)
    wsm = ws.reshape(n_anchor * 2, mid_channels).T     # (Cmid, 2A)
    # Fold the 2-way softmax fg prob into the score head: fg_a = sigmoid(s1-s0).
    dmat = np.zeros((n_anchor * 2, n_anchor), np.float32)
    for aa in range(n_anchor):
        dmat[2 * aa, aa] = -1.0
        dmat[2 * aa + 1, aa] = 1.0
    dmat = jnp.asarray(dmat)
    wfg = wsm @ dmat                                   # (Cmid, A)
    bfg = bs @ dmat                                    # (A,)
    pad = HEAD_W - 7 * n_anchor
    wh = jnp.concatenate(
        [wlm, wsm, wfg, jnp.zeros((mid_channels, pad), jnp.float32)],
        axis=1).astype(jnp.bfloat16)                   # (Cmid, 128)
    bh = jnp.concatenate([bl, bs, bfg,
                          jnp.zeros((pad,), jnp.float32)])[None, :]  # (1, 128)
    return dict(w1m=w1m, b1=b1, wh=wh, bh=bh, n_anchor=n_anchor)


if __name__ == "__main__":
    key = jax.random.PRNGKey(0)
    N, C_in, C_mid, H, W = 2, 16, 32, 16, 16
    feat_stride = 16
    anchor_base = generate_anchor_base(base_size=16, ratios=[0.5, 1, 2],
                                       anchor_scales=[8, 16, 32])
    n_anchor = anchor_base.shape[0]  # 9

    kx, kp = jax.random.split(key)
    x = jax.random.normal(kx, (N, C_in, H, W), jnp.float32)   # NCHW like PyTorch
    params = init_params(kp, C_in, C_mid, n_anchor)
    img_size = (H * feat_stride, W * feat_stride)             # (img_h, img_w)

    outs = rpn_forward(x, params, img_size, scale=1.0, mode="training",
                       feat_stride=feat_stride, anchor_base=anchor_base,
                       row_tile=8)
    outs = jax.block_until_ready(outs)
    rpn_locs, rpn_scores, rois, roi_indices, anchor = outs

    Ktot = H * W * n_anchor
    assert rpn_locs.shape == (N, Ktot, 4)
    assert rpn_scores.shape == (N, Ktot, 2)
    assert rois.shape == (N, 600, 4)
    assert roi_indices.shape == (N, 600)
    assert anchor.shape == (1, Ktot, 4)
    assert np.all(np.isfinite(np.asarray(rois)))
    print("KERNEL_OK")
</pallas_src>

<mosaic_0001>
module attributes {stable_mosaic.version = 11 : i64} {
  func.func @kernel(%arg0: i32, %arg1: memref<1x10x18x16xbf16, #tpu.memory_space<vmem>>, %arg2: memref<9x16x32xbf16, #tpu.memory_space<vmem>>, %arg3: memref<1x32xf32, #tpu.memory_space<vmem>>, %arg4: memref<32x128xbf16, #tpu.memory_space<vmem>>, %arg5: memref<1x128xf32, #tpu.memory_space<vmem>>, %arg6: memref<128x128xf32, #tpu.memory_space<vmem>>) attributes {dimension_semantics = [#tpu.dimension_semantics<parallel>], iteration_bounds = array<i64: 4>, scalar_prefetch = 0 : i64, scratch_operands = 0 : i64, tpu.core_type = #tpu.core_type<tc>, window_params = [{transform_indices = @transform_0, window_bounds = array<i64: 1, 10, 18, 16>}, {pipeline_mode = #tpu.pipeline_mode<synchronous>, transform_indices = @transform_1, window_bounds = array<i64: 9, 16, 32>}, {pipeline_mode = #tpu.pipeline_mode<synchronous>, transform_indices = @transform_2, window_bounds = array<i64: 1, 32>}, {pipeline_mode = #tpu.pipeline_mode<synchronous>, transform_indices = @transform_3, window_bounds = array<i64: 32, 128>}, {pipeline_mode = #tpu.pipeline_mode<synchronous>, transform_indices = @transform_4, window_bounds = array<i64: 1, 128>}, {transform_indices = @transform_5, window_bounds = array<i64: 128, 128>}]} {
    %c0 = arith.constant 0 : index
    %c0_0 = arith.constant 0 : index
    %c0_1 = arith.constant 0 : index
    %c0_2 = arith.constant 0 : index
    %0 = vector.load %arg1[%c0, %c0_0, %c0_1, %c0_2] : memref<1x10x18x16xbf16, #tpu.memory_space<vmem>>, vector<1x10x18x16xbf16>
    %1 = vector.shape_cast %0 : vector<1x10x18x16xbf16> to vector<10x18x16xbf16>
    %cst = arith.constant 0.000000e+00 : f32
    %2 = vector.broadcast %cst : f32 to vector<128x32xf32>
    %3 = vector.extract_strided_slice %1 {offsets = [0, 0, 0], sizes = [8, 16, 16], strides = [1, 1, 1]} : vector<10x18x16xbf16> to vector<8x16x16xbf16>
    %4 = vector.shape_cast %3 : vector<8x16x16xbf16> to vector<128x16xbf16>
    %c0_3 = arith.constant 0 : index
    %c0_4 = arith.constant 0 : index
    %c0_5 = arith.constant 0 : index
    %5 = vector.load %arg2[%c0_3, %c0_4, %c0_5] : memref<9x16x32xbf16, #tpu.memory_space<vmem>>, vector<1x16x32xbf16>
    %6 = vector.shape_cast %5 : vector<1x16x32xbf16> to vector<16x32xbf16>
    %cst_6 = arith.constant dense<0.000000e+00> : vector<128x32xf32>
    %7 = tpu.matmul %4, %6, %cst_6 {dimension_numbers = #tpu.dot_dimension_numbers<[1], [0], [0], [1], [0, 0, 1, 1], [], []>} : vector<128x16xbf16>, vector<16x32xbf16>, vector<128x32xf32> -> vector<128x32xf32>
    %8 = arith.addf %2, %7 : vector<128x32xf32>
    %9 = vector.extract_strided_slice %1 {offsets = [0, 1, 0], sizes = [8, 16, 16], strides = [1, 1, 1]} : vector<10x18x16xbf16> to vector<8x16x16xbf16>
    %10 = vector.shape_cast %9 : vector<8x16x16xbf16> to vector<128x16xbf16>
    %c1 = arith.constant 1 : index
    %c0_7 = arith.constant 0 : index
    %c0_8 = arith.constant 0 : index
    %11 = vector.load %arg2[%c1, %c0_7, %c0_8] : memref<9x16x32xbf16, #tpu.memory_space<vmem>>, vector<1x16x32xbf16>
    %12 = vector.shape_cast %11 : vector<1x16x32xbf16> to vector<16x32xbf16>
    %cst_9 = arith.constant dense<0.000000e+00> : vector<128x32xf32>
    %13 = tpu.matmul %10, %12, %cst_9 {dimension_numbers = #tpu.dot_dimension_numbers<[1], [0], [0], [1], [0, 0, 1, 1], [], []>} : vector<128x16xbf16>, vector<16x32xbf16>, vector<128x32xf32> -> vector<128x32xf32>
    %14 = arith.addf %8, %13 : vector<128x32xf32>
    %15 = vector.extract_strided_slice %1 {offsets = [0, 2, 0], sizes = [8, 16, 16], strides = [1, 1, 1]} : vector<10x18x16xbf16> to vector<8x16x16xbf16>
    %16 = vector.shape_cast %15 : vector<8x16x16xbf16> to vector<128x16xbf16>
    %c2 = arith.constant 2 : index
    %c0_10 = arith.constant 0 : index
    %c0_11 = arith.constant 0 : index
    %17 = vector.load %arg2[%c2, %c0_10, %c0_11] : memref<9x16x32xbf16, #tpu.memory_space<vmem>>, vector<1x16x32xbf16>
    %18 = vector.shape_cast %17 : vector<1x16x32xbf16> to vector<16x32xbf16>
    %cst_12 = arith.constant dense<0.000000e+00> : vector<128x32xf32>
    %19 = tpu.matmul %16, %18, %cst_12 {dimension_numbers = #tpu.dot_dimension_numbers<[1], [0], [0], [1], [0, 0, 1, 1], [], []>} : vector<128x16xbf16>, vector<16x32xbf16>, vector<128x32xf32> -> vector<128x32xf32>
    %20 = arith.addf %14, %19 : vector<128x32xf32>
    %21 = vector.extract_strided_slice %1 {offsets = [1, 0, 0], sizes = [8, 16, 16], strides = [1, 1, 1]} : vector<10x18x16xbf16> to vector<8x16x16xbf16>
    %22 = vector.shape_cast %21 : vector<8x16x16xbf16> to vector<128x16xbf16>
    %c3 = arith.constant 3 : index
    %c0_13 = arith.constant 0 : index
    %c0_14 = arith.constant 0 : index
    %23 = vector.load %arg2[%c3, %c0_13, %c0_14] : memref<9x16x32xbf16, #tpu.memory_space<vmem>>, vector<1x16x32xbf16>
    %24 = vector.shape_cast %23 : vector<1x16x32xbf16> to vector<16x32xbf16>
    %cst_15 = arith.constant dense<0.000000e+00> : vector<128x32xf32>
    %25 = tpu.matmul %22, %24, %cst_15 {dimension_numbers = #tpu.dot_dimension_numbers<[1], [0], [0], [1], [0, 0, 1, 1], [], []>} : vector<128x16xbf16>, vector<16x32xbf16>, vector<128x32xf32> -> vector<128x32xf32>
    %26 = arith.addf %20, %25 : vector<128x32xf32>
    %27 = vector.extract_strided_slice %1 {offsets = [1, 1, 0], sizes = [8, 16, 16], strides = [1, 1, 1]} : vector<10x18x16xbf16> to vector<8x16x16xbf16>
    %28 = vector.shape_cast %27 : vector<8x16x16xbf16> to vector<128x16xbf16>
    %c4 = arith.constant 4 : index
    %c0_16 = arith.constant 0 : index
    %c0_17 = arith.constant 0 : index
    %29 = vector.load %arg2[%c4, %c0_16, %c0_17] : memref<9x16x32xbf16, #tpu.memory_space<vmem>>, vector<1x16x32xbf16>
    %30 = vector.shape_cast %29 : vector<1x16x32xbf16> to vector<16x32xbf16>
    %cst_18 = arith.constant dense<0.000000e+00> : vector<128x32xf32>
    %31 = tpu.matmul %28, %30, %cst_18 {dimension_numbers = #tpu.dot_dimension_numbers<[1], [0], [0], [1], [0, 0, 1, 1], [], []>} : vector<128x16xbf16>, vector<16x32xbf16>, vector<128x32xf32> -> vector<128x32xf32>
    %32 = arith.addf %26, %31 : vector<128x32xf32>
    %33 = vector.extract_strided_slice %1 {offsets = [1, 2, 0], sizes = [8, 16, 16], strides = [1, 1, 1]} : vector<10x18x16xbf16> to vector<8x16x16xbf16>
    %34 = vector.shape_cast %33 : vector<8x16x16xbf16> to vector<128x16xbf16>
    %c5 = arith.constant 5 : index
    %c0_19 = arith.constant 0 : index
    %c0_20 = arith.constant 0 : index
    %35 = vector.load %arg2[%c5, %c0_19, %c0_20] : memref<9x16x32xbf16, #tpu.memory_space<vmem>>, vector<1x16x32xbf16>
    %36 = vector.shape_cast %35 : vector<1x16x32xbf16> to vector<16x32xbf16>
    %cst_21 = arith.constant dense<0.000000e+00> : vector<128x32xf32>
    %37 = tpu.matmul %34, %36, %cst_21 {dimension_numbers = #tpu.dot_dimension_numbers<[1], [0], [0], [1], [0, 0, 1, 1], [], []>} : vector<128x16xbf16>, vector<16x32xbf16>, vector<128x32xf32> -> vector<128x32xf32>
    %38 = arith.addf %32, %37 : vector<128x32xf32>
    %39 = vector.extract_strided_slice %1 {offsets = [2, 0, 0], sizes = [8, 16, 16], strides = [1, 1, 1]} : vector<10x18x16xbf16> to vector<8x16x16xbf16>
    %40 = vector.shape_cast %39 : vector<8x16x16xbf16> to vector<128x16xbf16>
    %c6 = arith.constant 6 : index
    %c0_22 = arith.constant 0 : index
    %c0_23 = arith.constant 0 : index
    %41 = vector.load %arg2[%c6, %c0_22, %c0_23] : memref<9x16x32xbf16, #tpu.memory_space<vmem>>, vector<1x16x32xbf16>
    %42 = vector.shape_cast %41 : vector<1x16x32xbf16> to vector<16x32xbf16>
    %cst_24 = arith.constant dense<0.000000e+00> : vector<128x32xf32>
    %43 = tpu.matmul %40, %42, %cst_24 {dimension_numbers = #tpu.dot_dimension_numbers<[1], [0], [0], [1], [0, 0, 1, 1], [], []>} : vector<128x16xbf16>, vector<16x32xbf16>, vector<128x32xf32> -> vector<128x32xf32>
    %44 = arith.addf %38, %43 : vector<128x32xf32>
    %45 = vector.extract_strided_slice %1 {offsets = [2, 1, 0], sizes = [8, 16, 16], strides = [1, 1, 1]} : vector<10x18x16xbf16> to vector<8x16x16xbf16>
    %46 = vector.shape_cast %45 : vector<8x16x16xbf16> to vector<128x16xbf16>
    %c7 = arith.constant 7 : index
    %c0_25 = arith.constant 0 : index
    %c0_26 = arith.constant 0 : index
    %47 = vector.load %arg2[%c7, %c0_25, %c0_26] : memref<9x16x32xbf16, #tpu.memory_space<vmem>>, vector<1x16x32xbf16>
    %48 = vector.shape_cast %47 : vector<1x16x32xbf16> to vector<16x32xbf16>
    %cst_27 = arith.constant dense<0.000000e+00> : vector<128x32xf32>
    %49 = tpu.matmul %46, %48, %cst_27 {dimension_numbers = #tpu.dot_dimension_numbers<[1], [0], [0], [1], [0, 0, 1, 1], [], []>} : vector<128x16xbf16>, vector<16x32xbf16>, vector<128x32xf32> -> vector<128x32xf32>
    %50 = arith.addf %44, %49 : vector<128x32xf32>
    %51 = vector.extract_strided_slice %1 {offsets = [2, 2, 0], sizes = [8, 16, 16], strides = [1, 1, 1]} : vector<10x18x16xbf16> to vector<8x16x16xbf16>
    %52 = vector.shape_cast %51 : vector<8x16x16xbf16> to vector<128x16xbf16>
    %c8 = arith.constant 8 : index
    %c0_28 = arith.constant 0 : index
    %c0_29 = arith.constant 0 : index
    %53 = vector.load %arg2[%c8, %c0_28, %c0_29] : memref<9x16x32xbf16, #tpu.memory_space<vmem>>, vector<1x16x32xbf16>
    %54 = vector.shape_cast %53 : vector<1x16x32xbf16> to vector<16x32xbf16>
    %cst_30 = arith.constant dense<0.000000e+00> : vector<128x32xf32>
    %55 = tpu.matmul %52, %54, %cst_30 {dimension_numbers = #tpu.dot_dimension_numbers<[1], [0], [0], [1], [0, 0, 1, 1], [], []>} : vector<128x16xbf16>, vector<16x32xbf16>, vector<128x32xf32> -> vector<128x32xf32>
    %56 = arith.addf %50, %55 : vector<128x32xf32>
    %c0_31 = arith.constant 0 : index
    %c0_32 = arith.constant 0 : index
    %57 = vector.load %arg3[%c0_31, %c0_32] : memref<1x32xf32, #tpu.memory_space<vmem>>, vector<1x32xf32>
    %58 = vector.broadcast %57 : vector<1x32xf32> to vector<128x32xf32>
    %59 = arith.addf %56, %58 : vector<128x32xf32>
    %cst_33 = arith.constant 0.000000e+00 : f32
    %60 = vector.broadcast %cst_33 : f32 to vector<128x32xf32>
    %61 = arith.maximumf %59, %60 : vector<128x32xf32>
    %62 = arith.truncf %61 : vector<128x32xf32> to vector<128x32xbf16>
    %c0_34 = arith.constant 0 : index
    %c0_35 = arith.constant 0 : index
    %63 = vector.load %arg4[%c0_34, %c0_35] : memref<32x128xbf16, #tpu.memory_space<vmem>>, vector<32x128xbf16>
    %cst_36 = arith.constant dense<0.000000e+00> : vector<128x128xf32>
    %64 = tpu.matmul %62, %63, %cst_36 {dimension_numbers = #tpu.dot_dimension_numbers<[1], [0], [0], [1], [0, 0, 1, 1], [], []>} : vector<128x32xbf16>, vector<32x128xbf16>, vector<128x128xf32> -> vector<128x128xf32>
    %c0_37 = arith.constant 0 : index
    %c0_38 = arith.constant 0 : index
    %65 = vector.load %arg5[%c0_37, %c0_38] : memref<1x128xf32, #tpu.memory_space<vmem>>, vector<1x128xf32>
    %66 = vector.broadcast %65 : vector<1x128xf32> to vector<128x128xf32>
    %67 = arith.addf %64, %66 : vector<128x128xf32>
    %cst_39 = arith.constant 0.000000e+00 : f32
    %68 = vector.broadcast %cst_39 : f32 to vector<128x128xf32>
    %69 = arith.subf %68, %67 : vector<128x128xf32>
    %70 = math.exp %69 : vector<128x128xf32>
    %cst_40 = arith.constant 1.000000e+00 : f32
    %71 = vector.broadcast %cst_40 : f32 to vector<128x128xf32>
    %72 = arith.addf %71, %70 : vector<128x128xf32>
    %73 = tpu.reciprocal %72 {approx = true} : vector<128x128xf32> -> vector<128x128xf32>
    %74 = tpu.iota {dimensions = array<i32: 1>} : vector<128x128xi32>
    %c54_i32 = arith.constant 54 : i32
    %75 = vector.broadcast %c54_i32 : i32 to vector<128x128xi32>
    %76 = arith.cmpi sge, %74, %75 : vector<128x128xi32>
    %c63_i32 = arith.constant 63 : i32
    %77 = vector.broadcast %c63_i32 : i32 to vector<128x128xi32>
    %78 = arith.cmpi slt, %74, %77 : vector<128x128xi32>
    %79 = arith.andi %76, %78 : vector<128x128xi1>
    %80 = arith.select %79, %73, %67 : vector<128x128xi1>, vector<128x128xf32>
    %c0_41 = arith.constant 0 : index
    %c0_42 = arith.constant 0 : index
    %81 = vector.load %arg6[%c0_41, %c0_42] : memref<128x128xf32, #tpu.memory_space<vmem>>, vector<128x128xf32>
    tpu.vector_store %arg6[%c0_41, %c0_42], %80 {strides = array<i32>} : memref<128x128xf32, #tpu.memory_space<vmem>>, vector<128x128xf32>,
    return
  }
  func.func @transform_0(%arg0: i32) -> (i32, i32, i32, i32) {
    %c0_i32 = arith.constant 0 : i32
    %c0_i32_0 = arith.constant 0 : i32
    %c0_i32_1 = arith.constant 0 : i32
    %c0_i32_2 = arith.constant 0 : i32
    return %arg0, %c0_i32, %c0_i32_0, %c0_i32_1 : i32, i32, i32, i32
  }
  func.func @transform_1(%arg0: i32) -> (i32, i32, i32) {
    %c0_i32 = arith.constant 0 : i32
    %c0_i32_0 = arith.constant 0 : i32
    %c0_i32_1 = arith.constant 0 : i32
    %c0_i32_2 = arith.constant 0 : i32
    return %c0_i32, %c0_i32_0, %c0_i32_1 : i32, i32, i32
  }
  func.func @transform_2(%arg0: i32) -> (i32, i32) {
    %c0_i32 = arith.constant 0 : i32
    %c0_i32_0 = arith.constant 0 : i32
    %c0_i32_1 = arith.constant 0 : i32
    return %c0_i32, %c0_i32_0 : i32, i32
  }
  func.func @transform_3(%arg0: i32) -> (i32, i32) {
    %c0_i32 = arith.constant 0 : i32
    %c0_i32_0 = arith.constant 0 : i32
    %c0_i32_1 = arith.constant 0 : i32
    return %c0_i32, %c0_i32_0 : i32, i32
  }
  func.func @transform_4(%arg0: i32) -> (i32, i32) {
    %c0_i32 = arith.constant 0 : i32
    %c0_i32_0 = arith.constant 0 : i32
    %c0_i32_1 = arith.constant 0 : i32
    return %c0_i32, %c0_i32_0 : i32, i32
  }
  func.func @transform_5(%arg0: i32) -> (i32, i32) {
    %c0_i32 = arith.constant 0 : i32
    %c0_i32_0 = arith.constant 0 : i32
    return %arg0, %c0_i32 : i32, i32
  }
}

</mosaic_0001>

<bundles_post_ra>
// kernel: tpu_custom_call.1
= control target key start
LH: loop header
LB: loop body
LE: loop exit
PB: predicated region body
PF: predicated region fallthrough
CT: control target
= control target key end

     0   :  { %10 = vsyncpa [#allocation3], 0  ;;  %s3807_s0 = inlined_call_operand.vmem [shape: bf16[4,10,18,16], index: 0, kind: input, shape index: {}]   ;;  %s3808_s1 = inlined_call_operand.vmem [shape: bf16[9,16,32], index: 1, kind: input, shape index: {}]   ;;  %s3809_s2 = inlined_call_operand.vmem [shape: f32[1,32], index: 2, kind: input, shape index: {}]   ;;  %s3810_s3 = inlined_call_operand.vmem [shape: bf16[32,128], index: 3, kind: input, shape index: {}]   ;;  %s3811_s4 = inlined_call_operand.vmem [shape: f32[1,128], index: 4, kind: input, shape index: {}]   ;;  %s3812_s5 = inlined_call_operand.hbm [shape: f32[512,128], index: 5, kind: output, shape index: {}]  }
   0x1   :  { %12 = vsyncpa [#allocation3 + $0x1], 0  ;;  %s3018_s18 = smov 0   ;;  %s3020_s19 = smov 0  }
   0x2   :  { %s3022_s20 = smov 0   ;;  %s3024_s21 = smov 0  }
   0x3 LB: > { %s3039_s22 = sadd.s32 4294967295, %s2983_s21   ;;  %s2232_s23 = sadd.s32 4294967294, %s2983_s21   ;;  %s2983_s21 = sphi %s3024_s21, %s3824_s21   ;;  %s2979_s20 = sphi %s3022_s20, %s3823_s20   ;;  %s2975_s19 = sphi %s3020_s19, %s3822_s19   ;;  %s2971_s18 = sphi %s3018_s18, %s3821_s18  }
   0x4   : > { %s3043_s24 = sadd.s32 1, %s2983_s21   ;;  %s135_s25 = sadd.s32 1, %s2979_s20 }
   0x5   : > { %s132_s26 = ssub.s32 %s2983_s21, %s3043_s24  ;;  %p145_p0 = scmp.ne.s32.totalorder %s2979_s20, %s2975_s19 }
   0x6   : > { %p133_p1 = scmp.eq.s32.totalorder %s132_s26, 0  ;;  %p146_p2 = scmp.eq.s32.totalorder %s3039_s22, 3 }
   0x7   : > { %p151_p3 = scmp.ne.s32.totalorder %s2975_s19, %s2971_s18  ;;  %p152_p4 = scmp.eq.s32.totalorder %s2232_s23, 3 }
   0x8   : > { %s3054_s27 = scalar_select %p133_p1, %s2979_s20, %s135_s25  }
   0x9   : > { %p3056_p5 = por %p146_p2, %p145_p0  ;;  %p3060_p6 = por %p152_p4, %p151_p3 }
   0xa   : > { %p2235_p7 = scmp.ge.s32.totalorder %s2983_s21, 1  ;;  %p190_p8 = scmp.lt.s32.totalorder %s2983_s21, 5 }
   0xc   : > { %p191_p9 = pnand %p2235_p7, %p190_p8 }
   0xd   : > { %v2836_v0 = vld [vmem:[%s3808_s1 + $0x20] sm:$0xff] (!%p191_p9)   ;;  %p218_p10 = scmp.lt.s32.totalorder (!%p191_p9), %s3039_s22, 3  ;;  %v2837_v1 = vld [vmem:[%s3808_s1 + $0x8] sm:$0xff] (!%p191_p9)   ;;  %vm257_vm0 = vsmask.f32 (!%p191_p9), 3328  ;;  %vm485_vm3 = vcmask (!%p191_p9), 130048  }
   0xe   : > { %194 = sbr.rel (%p191_p9) target bundleno = 686 (0x2ae), region = 40  ;;  %2556 = vmatprep.subr.bf16.mxu0 (!%p191_p9), %v2836_v0  ;;  %v3077_v2 = vld [vmem:[%s3808_s1 + $0x28] sm:$0xff] (!%p191_p9)   ;;  %2484 = vmatprep.subr.bf16.mxu1 (!%p191_p9), %v2837_v1  ;;  %v3083_v3 = vld [vmem:[%s3808_s1] sm:$0xff] (!%p191_p9)   ;;  %vm258_vm1 = vsmask.f32 (!%p191_p9), 7440  ;;  %vm782_vm4 = vcmask (!%p191_p9), 1042432  }
   0xf   : > { %2557 = vmatpush3.bf16.msra.mxu0 (!%p191_p9), %v2836_v0  ;;  %2485 = vmatpush3.bf16.msra.mxu1 (!%p191_p9), %v2837_v1  ;;  %vm3124_vm2 = vmor (!%p191_p9), %vm257_vm0, %vm258_vm1  ;;  %vm783_vm5 = vcmask (!%p191_p9), 1046532   ;;  %vm1917_vm7 = vcmask (!%p191_p9), 261120   ;;  %s215_s26 = sand.u32 (!%p191_p9), 1, %s2975_s19   ;;  %s2392_s7 = sshll.u32 (!%p191_p9), %s3039_s22, 11 }
  0x10   : > { %2574 = vmatprep.subr.bf16.mxu0 (!%p191_p9), %v3077_v2  ;;  %2502 = vmatprep.subr.bf16.mxu1 (!%p191_p9), %v3083_v3  ;;  %vm3297_vm6 = vmor (!%p191_p9), %vm782_vm4, %vm783_vm5  ;;  %s2236_s30 = sshll.u32 (!%p191_p9), %s215_s26, 7  ;;  %s3751_s11 = scalar_lea.hbm (!%p191_p9), %s3812_s5, %s2392_s7 }
  0x11   : > { %s3692_s6 = scalar_lea.vmem (!%p191_p9), [#allocation2], %s2236_s30  ;;  %s2985_s13 = smov (!%p191_p9), [#allocation2]  }
  0x12   : > { %s2170_s8 = sshll.u32 (!%p191_p9), %s3692_s6, 4  ;;  %s2925_s14 = sshll.u32 (!%p191_p9), %s2985_s13, 4  ;;  %s3753_s8 = int_to_ptr.vmem [resolvable:$true] %s2170_s8  ;;  %s2926_s14 = int_to_ptr.vmem [resolvable:$false] %s2925_s14 }
  0x13   : > { %s2927_s15 = scalar_lea.vmem (!%p191_p9), %s2926_s14, 4096  ;;  %p2928_p0 = scmp.lt.s32.totalorder (!%p191_p9), %s3753_s8, %s2926_s14 }
  0x15   : > { %s219_s9 = scalar_select %p218_p10, %s3039_s22, 3 }
  0x16   : > { %s3766_s22 = scalar_lea.sflag [#allocation3], %s215_s26 }
  0x17   : > { %s2794_s12 = smul.u32 120, %s219_s9 }
  0x19   : > { %s3088_s17 = scalar_lea.vmem %s3807_s0, %s2794_s12  ;;  %s2921_s12 = scalar_lea.vmem %s3753_s8, 2048 }
  0x1a   : > { %v3092_v4 = vld [vmem:[%s3088_s17] sm:$0xf]  ;;  %v3095_v5 = vld [vmem:[%s3088_s17 + $0x4] sm:$0xf]  ;;  %v3098_v6 = vld [vmem:[%s3088_s17 + $0x8] sm:$0x1]  ;;  %p2922_p11 = scmp.ne.s32.totalorder %s3753_s8, %s2921_s12  ;;  %p2929_p1 = scmp.lt.s32.totalorder %s2927_s15, %s2921_s12 }
  0x1b   : > { %v261_v7 = vshrl.u32 %v3092_v4, 16  ;;  %v264_v8 = vshll.u32 %v3092_v4, 16  ;;  %v270_v9 = vshll.u32 %v3095_v5, 16  ;;  %v274_v10 = vshrl.u32 %v3095_v5, 16  ;;  %v3105_v11 = vld [vmem:[%s3088_s17 + $0xc] sm:$0xf] }
  0x1c   : > { %v280_v12 = vshll.u32 %v3098_v6, 16  ;;  %v3109_v13 = vld [vmem:[%s3088_s17 + $0x10] sm:$0xf]  ;;  %v3112_v14 = vld [vmem:[%s3088_s17 + $0x14] sm:$0x1]  ;;  %v285_v20 = vshrl.u32 %v3105_v11, 16  ;;  %p2923_p12 = pnand %p2922_p11, %p3056_p5  ;;  %p2930_p2 = por %p2929_p1, %p2928_p0 }
  0x1d   : > { %v263_v15 = vrot.slane %v261_v7, 4  ;;  %v266_v16 = vrot.slane %v264_v8, 5  ;;  %v272_v17 = vrot.slane %v270_v9, 5  ;;  %v276_v18 = vrot.slane %v274_v10, 4  ;;  %v3120_v27 = vld [vmem:[%s3088_s17 + $0x18] sm:$0xf] }
  0x1e   : > { %v282_v19 = vrot.slane %v280_v12, 5  ;;  %v288_v21 = vshll.u32 %v3105_v11, 16  ;;  %v294_v22 = vshll.u32 %v3109_v13, 16  ;;  %v298_v25 = vshrl.u32 %v3109_v13, 16  ;;  %v3129_v32 = vld [vmem:[%s3088_s17 + $0x1c] sm:$0xf]  ;;  %p2924_p13 = pneg %p2923_p12 }
  0x1f   : > { %v267_v23 = vor.u32 %v266_v16, %v263_v15  ;;  %v277_v24 = vor.u32 %v276_v18, %v272_v17  ;;  %v304_v26 = vshll.u32 %v3112_v14, 16  ;;  %v287_v29 = vrot.slane %v285_v20, 4  ;;  %v3132_v38 = vld [vmem:[%s3088_s17 + $0x20] sm:$0x1]  ;;  %v3142_v49 = vld [vmem:[%s3088_s17 + $0x24] sm:$0xf] }
  0x20   : > { %v290_v30 = vrot.slane %v288_v21, 5  ;;  %v296_v31 = vrot.slane %v294_v22, 5  ;;  %v300_v35 = vrot.slane %v298_v25, 4  ;;  %v309_v39 = vshrl.u32 %v3120_v27, 16  ;;  %v3147_v54 = vld [vmem:[%s3088_s17 + $0x28] sm:$0xf]  ;;  %p2931_p3 = pnand %p2930_p2, %p2924_p13 }
  0x21   : > { %v268_v33 = vrot.slane %v267_v23, 4  ;;  %v278_v34 = vrot.slane %v277_v24, 4  ;;  %v306_v37 = vrot.slane %v304_v26, 5  ;;  %v312_v40 = vshll.u32 %v3120_v27, 16  ;;  %v3153_v57 = vld [vmem:[%s3088_s17 + $0x2c] sm:$0x1] }
  0x22   : > { %v291_v36 = vor.u32 %v290_v30, %v287_v29  ;;  %v301_v43 = vor.u32 %v300_v35, %v296_v31  ;;  %v318_v44 = vshll.u32 %v3129_v32, 16  ;;  %v311_v47 = vrot.slane %v309_v39, 4  ;;  %v3159_v62 = vld [vmem:[%s3088_s17 + $0x30] sm:$0xf]  ;;  %v3171_v16 = vld [vmem:[%s3088_s17 + $0x34] sm:$0xf] }
  0x23   : > { %v273_v41 = vsel %vm3124_vm2, %v268_v33, %v272_v17  ;;  %v283_v42 = vsel %vm3124_vm2, %v278_v34, %v282_v19  ;;  %v314_v48 = vrot.slane %v312_v40, 5  ;;  %v322_v52 = vshrl.u32 %v3129_v32, 16  ;;  %v3166_v8 = vld [vmem:[%s3808_s1 + $0x10] sm:$0xff]   ;;  %v3178_v20 = vld [vmem:[%s3088_s17 + $0x38] sm:$0x1] }
  0x24   : > { %v2240_v45 = vcombine.low %v273_v41, %v283_v42  ;;  %v292_v46 = vrot.slane %v291_v36, 4  ;;  %v302_v50 = vrot.slane %v301_v43, 4  ;;  %v320_v51 = vrot.slane %v318_v44, 5  ;;  %v3186_v33 = vld [vmem:[%s3088_s17 + $0x3c] sm:$0xf]  ;;  %v3203_v44 = vld [vmem:[%s3808_s1 + $0x30] sm:$0xff]  }
  0x25   : > { %v328_v53 = vshll.u32 %v3132_v38, 16  ;;  %v315_v56 = vor.u32 %v314_v48, %v311_v47  ;;  %v324_v59 = vrot.slane %v322_v52, 4  ;;  %v333_v61 = vshrl.u32 %v3142_v49, 16  ;;  %v3193_v39 = vld [vmem:[%s3088_s17 + $0x40] sm:$0xf] }
  0x26   : > { %2486 = vmatprep.mubr.msk.bf16.mxu1 %vm485_vm3, %v2240_v45  ;;  %v297_v55 = vsel %vm3124_vm2, %v292_v46, %v296_v31  ;;  %v307_v58 = vsel %vm3124_vm2, %v302_v50, %v306_v37  ;;  %v336_v1 = vshll.u32 %v3142_v49, 16  ;;  %v342_v7 = vshll.u32 %v3147_v54, 16  ;;  %v3198_v43 = vld [vmem:[%s3088_s17 + $0x44] sm:$0x1] }
  0x27   : > { %v330_v60 = vrot.slane %v328_v53, 5  ;;  %v2241_v63 = vcombine.low %v297_v55, %v307_v58  ;;  %v316_v0 = vrot.slane %v315_v56, 4  ;;  %v325_v9 = vor.u32 %v324_v59, %v320_v51  ;;  %v3215_v55 = vld [vmem:[%s3088_s17 + $0x48] sm:$0xf]  ;;  %v3218_v56 = vld [vmem:[%s3088_s17 + $0x4c] sm:$0xf] }
  0x28   : > { %v335_v10 = vrot.slane %v333_v61, 4  ;;  %v346_v12 = vshrl.u32 %v3147_v54, 16  ;;  %v352_v15 = vshll.u32 %v3153_v57, 16  ;;  %v338_v18 = vrot.slane %v336_v1, 5 }
  0x29   : > { %2558 = vmatprep.mubr.msk.bf16.mxu0 %vm485_vm3, %v2241_v63  ;;  %2487 = vmatmul.mubr.msk.bf16.vlgmr.msra.gmra.mrb[0].mxu1 %vm485_vm3, %v2241_v63  ;;  %v321_v17 = vsel %vm3124_vm2, %v316_v0, %v320_v51  ;;  %v344_v19 = vrot.slane %v342_v7, 5  ;;  %v357_v21 = vshrl.u32 %v3159_v62, 16  ;;  %v326_v22 = vrot.slane %v325_v9, 4  ;;  %v3227_v9 = vld [vmem:[%s3088_s17 + $0x50] sm:$0x1] }
  0x2a   : > { %v348_v23 = vrot.slane %v346_v12, 4  ;;  %v354_v24 = vrot.slane %v352_v15, 5  ;;  %v360_v25 = vshll.u32 %v3159_v62, 16  ;;  %2503 = vmatpush3.bf16.msra.mxu1 %v3083_v3  ;;  %v339_v26 = vor.u32 %v338_v18, %v335_v10  ;;  %v3230_v10 = vld [vmem:[%s3088_s17 + $0x54] sm:$0xf] }
  0x2b   : > { %v359_v29 = vrot.slane %v357_v21, 4  ;;  %v366_v30 = vshll.u32 %v3171_v16, 16  ;;  %v370_v31 = vshrl.u32 %v3171_v16, 16  ;;  %2520 = vmatprep.subr.bf16.mxu1 %v3166_v8  ;;  %v331_v34 = vsel %vm3124_vm2, %v326_v22, %v330_v60 }
  0x2c   : > { %v349_v35 = vor.u32 %v348_v23, %v344_v19  ;;  %v362_v36 = vrot.slane %v360_v25, 5  ;;  %v376_v37 = vshll.u32 %v3178_v20, 16  ;;  %v3195_v3 = vcombine.low %v321_v17, %v331_v34  ;;  %v3246_v23 = vld [vmem:[%s3088_s17 + $0x58] sm:$0xf] }
  0x2d   : > { %v340_v40 = vrot.slane %v339_v26, 4  ;;  %v368_v41 = vrot.slane %v366_v30, 5  ;;  %v372_v42 = vrot.slane %v370_v31, 4  ;;  %v381_v48 = vshrl.u32 %v3186_v33, 16 }
  0x2e   : > { %v350_v45 = vrot.slane %v349_v35, 4  ;;  %v363_v46 = vor.u32 %v362_v36, %v359_v29  ;;  %v378_v47 = vrot.slane %v376_v37, 5  ;;  %2559 = vmatmul.mubr.msk.bf16.vlgmr.msra.gmra.mrb[0].mxu0 %vm485_vm3, %v3195_v3  ;;  %2490 = vmatprep.mubr.msk.bf16.mxu1 %vm485_vm3, %v3195_v3  ;;  %v384_v52 = vshll.u32 %v3186_v33, 16 }
  0x2f   : > { %v345_v50 = vsel %vm3124_vm2, %v340_v40, %v344_v19  ;;  %v373_v51 = vor.u32 %v372_v42, %v368_v41  ;;  %v390_v53 = vshll.u32 %v3193_v39, 16  ;;  %2575 = vmatpush3.bf16.msra.mxu0 %v3077_v2  ;;  %v383_v60 = vrot.slane %v381_v48, 4 }
  0x30   : > { %v355_v58 = vsel %vm3124_vm2, %v350_v45, %v354_v24  ;;  %v364_v59 = vrot.slane %v363_v46, 4  ;;  %v394_v61 = vshrl.u32 %v3193_v39, 16  ;;  %v386_v1 = vrot.slane %v384_v52, 5  ;;  %2592 = vmatprep.subr.bf16.mxu0 %v3203_v44 }
  0x31   : > { %v3224_v63 = vcombine.low %v345_v50, %v355_v58  ;;  %v374_v0 = vrot.slane %v373_v51, 4  ;;  %v392_v7 = vrot.slane %v390_v53, 5  ;;  %v400_v15 = vshll.u32 %v3198_v43, 16  ;;  %v3265_v50 = vld [vmem:[%s3088_s17 + $0x60] sm:$0xf] }
  0x32   : > { %v369_v2 = vsel %vm3124_vm2, %v364_v59, %v368_v41  ;;  %v396_v12 = vrot.slane %v394_v61, 4  ;;  %v405_v17 = vshrl.u32 %v3215_v55, 16  ;;  %v387_v19 = vor.u32 %v386_v1, %v383_v60  ;;  %v3270_v59 = vld [vmem:[%s3088_s17 + $0x64] sm:$0xf] }
  0x33   : > { %2562 = vmatprep.mubr.msk.bf16.mxu0 %vm485_vm3, %v3224_v63  ;;  %2491 = vmatmul.mubr.msk.bf16.gmra.mrb[4].mxu1 %vm485_vm3, %v3224_v63  ;;  %v379_v18 = vsel %vm3124_vm2, %v374_v0, %v378_v47  ;;  %v408_v21 = vshll.u32 %v3215_v55, 16  ;;  %v414_v22 = vshll.u32 %v3218_v56, 16  ;;  %v402_v26 = vrot.slane %v400_v15, 5  ;;  %v3261_v47 = vld [vmem:[%s3088_s17 + $0x5c] sm:$0x1] }
  0x34   : > { %v3248_v24 = vcombine.low %v369_v2, %v379_v18  ;;  %v397_v25 = vor.u32 %v396_v12, %v392_v7  ;;  %v407_v29 = vrot.slane %v405_v17, 4  ;;  %v388_v30 = vrot.slane %v387_v19, 4  ;;  %v3284_v19 = vld [vmem:[%s3088_s17 + $0x68] sm:$0x1] }
  0x35   : > { %v410_v31 = vrot.slane %v408_v21, 5  ;;  %v416_v34 = vrot.slane %v414_v22, 5  ;;  %v418_v35 = vshrl.u32 %v3218_v56, 16  ;;  %v424_v37 = vshll.u32 %v3227_v9, 16 }
  0x36   : > { %2494 = vmatprep.mubr.msk.bf16.mxu1 %vm485_vm3, %v3248_v24  ;;  %v398_v36 = vrot.slane %v397_v25, 4  ;;  %v429_v40 = vshrl.u32 %v3230_v10, 16  ;;  %v432_v41 = vshll.u32 %v3230_v10, 16  ;;  %2563 = vmatmul.mubr.msk.bf16.gmra.mrb[4].mxu0 %vm485_vm3, %v3248_v24  ;;  %v393_v42 = vsel %vm3124_vm2, %v388_v30, %v392_v7 }
  0x37   : > { %v411_v45 = vor.u32 %v410_v31, %v407_v29  ;;  %v420_v46 = vrot.slane %v418_v35, 4  ;;  %v438_v48 = vshll.u32 %v3246_v23, 16  ;;  %v426_v52 = vrot.slane %v424_v37, 5 }
  0x38   : > { %v403_v51 = vsel %vm3124_vm2, %v398_v36, %v402_v26  ;;  %v431_v53 = vrot.slane %v429_v40, 4  ;;  %v434_v58 = vrot.slane %v432_v41, 5  ;;  %v442_v2 = vshrl.u32 %v3246_v23, 16 }
  0x39   : > { %v3272_v60 = vcombine.low %v393_v42, %v403_v51  ;;  %v412_v61 = vrot.slane %v411_v45, 4  ;;  %v421_v0 = vor.u32 %v420_v46, %v416_v34  ;;  %v440_v1 = vrot.slane %v438_v48, 5 }
  0x3a   : > { %v435_v7 = vor.u32 %v434_v58, %v431_v53  ;;  %v448_v12 = vshll.u32 %v3261_v47, 16  ;;  %v1142_v15 = vshrl.u32 %v3265_v50, 16  ;;  %v1145_v21 = vshll.u32 %v3265_v50, 16 }
  0x3b   : > { %2566 = vmatprep.mubr.msk.bf16.mxu0 %vm485_vm3, %v3272_v60  ;;  %2495 = vmatmul.mubr.msk.bf16.gmra.mrb[8].mxu1 %vm485_vm3, %v3272_v60  ;;  %v417_v17 = vsel %vm3124_vm2, %v412_v61, %v416_v34  ;;  %v422_v18 = vrot.slane %v421_v0, 4  ;;  %v1151_v22 = vshll.u32 %v3270_v59, 16  ;;  %v797_v25 = vrot.slane %v3112_v14, 5 }
  0x3c   : > { %v436_v26 = vrot.slane %v435_v7, 4  ;;  %v444_v29 = vrot.slane %v442_v2, 4  ;;  %v1144_v30 = vrot.slane %v1142_v15, 4  ;;  %v1147_v35 = vrot.slane %v1145_v21, 5 }
  0x3d   : > { %v427_v31 = vsel %vm3124_vm2, %v422_v18, %v426_v52  ;;  %v1153_v36 = vrot.slane %v1151_v22, 5  ;;  %v1155_v37 = vshrl.u32 %v3270_v59, 16  ;;  %v450_v41 = vrot.slane %v448_v12, 5 }
  0x3e   : > { %v3292_v34 = vcombine.low %v417_v17, %v427_v31  ;;  %v445_v40 = vor.u32 %v444_v29, %v440_v1  ;;  %v1161_v42 = vshll.u32 %v3284_v19, 16  ;;  %v1148_v45 = vor.u32 %v1147_v35, %v1144_v30 }
  0x3f   : > { %v1157_v46 = vrot.slane %v1155_v37, 4  ;;  %v2275_v48 = vrot.slane %v3105_v11, 9  ;;  %v794_v51 = vrot.slane %v3109_v13, 5  ;;  %v801_v52 = vrot.slane %v3129_v32, 5 }
  0x40   : > { %2567 = vmatmul.mubr.msk.bf16.gmra.mrb[8].mxu0 %vm485_vm3, %v3292_v34  ;;  %2498 = vmatprep.mubr.msk.bf16.mxu1 %vm485_vm3, %v3292_v34  ;;  %v441_v53 = vsel %vm3124_vm2, %v436_v26, %v440_v1  ;;  %v446_v58 = vrot.slane %v445_v40, 4  ;;  %v1149_v61 = vrot.slane %v1148_v45, 4  ;;  %v1163_v7 = vrot.slane %v1161_v42, 5 }
  0x41   : > { %v1158_v0 = vor.u32 %v1157_v46, %v1153_v36  ;;  %v796_v2 = vrot.slane %v794_v51, 4  ;;  %v2257_v15 = vcombine.low %v3092_v4, %v3095_v5  ;;  %v795_v17 = vsel %vm3297_vm6, %v2275_v48, %v794_v51 }
  0x42   : > { %v451_v12 = vsel %vm3124_vm2, %v446_v58, %v450_v41  ;;  %v1154_v21 = vsel %vm3124_vm2, %v1149_v61, %v1153_v36  ;;  %v804_v26 = vrot.slane %v3132_v38, 5  ;;  %v2276_v29 = vrot.slane %v3120_v27, 9 }
  0x43   : > { %v3316_v18 = vcombine.low %v441_v53, %v451_v12  ;;  %v1159_v1 = vrot.slane %v1158_v0, 4  ;;  %v798_v22 = vsel %vm3297_vm6, %v796_v2, %v797_v25  ;;  %v803_v30 = vrot.slane %v801_v52, 4 }
  0x44   : > { %v808_v31 = vrot.slane %v3147_v54, 5  ;;  %v3331_v36 = vcombine.low %v795_v17, %v798_v22  ;;  %v2277_v25 = vrot.slane %v3142_v49, 9  ;;  %v811_v40 = vrot.slane %v3153_v57, 5 }
  0x45   : > { %2570 = vmatprep.mubr.msk.bf16.mxu0 %vm485_vm3, %v3316_v18  ;;  %2499 = vmatmul.mubr.msk.bf16.gmra.mrb[12].mxu1 %vm485_vm3, %v3316_v18  ;;  %v1164_v35 = vsel %vm3124_vm2, %v1159_v1, %v1163_v7  ;;  %v815_v41 = vrot.slane %v3171_v16, 5  ;;  %v822_v42 = vrot.slane %v3193_v39, 5  ;;  %v3342_v45 = vcombine.low %v3105_v11, %v3109_v13 }
  0x46   : > { %v3334_v37 = vcombine.low %v1154_v21, %v1164_v35  ;;  %2504 = vmatprep.mubr.msk.bf16.mxu1 %vm485_vm3, %v2257_v15  ;;  %v810_v38 = vrot.slane %v808_v31, 4  ;;  %v802_v46 = vsel %vm3297_vm6, %v2276_v29, %v801_v52  ;;  %v805_v48 = vsel %vm3297_vm6, %v803_v30, %v804_v26 }
  0x47   : > { %v3352_v57 = vcombine.low %v3120_v27, %v3129_v32  ;;  %v809_v11 = vsel %vm3297_vm6, %v2277_v25, %v808_v31  ;;  %v2278_v13 = vrot.slane %v3159_v62, 9  ;;  %v817_v51 = vrot.slane %v815_v41, 4  ;;  %v3367_v32 = vld [vmem:[%s3808_s1 + $0x18] sm:$0xff]   ;;  %v3425_v31 = vld [vmem:[%s3088_s17 + $0x70] sm:$0xf] }
  0x48   : > { %2571 = vmatmul.mubr.msk.bf16.gmra.mrb[12].mxu0 %vm485_vm3, %v3334_v37  ;;  %v818_v53 = vrot.slane %v3178_v20, 5  ;;  %v812_v52 = vsel %vm3297_vm6, %v810_v38, %v811_v40  ;;  %v2279_v58 = vrot.slane %v3186_v33, 9  ;;  %v824_v61 = vrot.slane %v822_v42, 4 }
  0x49   : > { %2576 = vmatprep.mubr.msk.bf16.mxu0 %vm485_vm3, %v3331_v36  ;;  %v825_v27 = vrot.slane %v3198_v43, 5  ;;  %v3369_v0 = vcombine.low %v802_v46, %v805_v48  ;;  %v3373_v7 = vcombine.low %v809_v11, %v812_v52  ;;  %v816_v20 = vsel %vm3297_vm6, %v2278_v13, %v815_v41 }
  0x4a   : > { %v819_v2 = vsel %vm3297_vm6, %v817_v51, %v818_v53  ;;  %v829_v43 = vrot.slane %v3218_v56, 5  ;;  %v790_v12 = vrot.slane %v3098_v6, 5  ;;  %v3385_v15 = vcombine.low %v3142_v49, %v3147_v54  ;;  %v3395_v6 = vld [vmem:[%s3808_s1 + $0x38] sm:$0xff]  }
  0x4b   : > { %v823_v17 = vsel %vm3297_vm6, %v2279_v58, %v822_v42  ;;  %v826_v21 = vsel %vm3297_vm6, %v824_v61, %v825_v27  ;;  %v3399_v1 = vcombine.low %v3159_v62, %v3171_v16  ;;  %v2280_v49 = vrot.slane %v3215_v55, 9  ;;  %v3416_v16 = vld [vmem:[%s3088_s17 + $0x6c] sm:$0xf] }
  0x4c   : > { %v832_v54 = vrot.slane %v3227_v9, 5  ;;  %v2274_v22 = vrot.slane %v3092_v4, 9  ;;  %v2281_v26 = vrot.slane %v3230_v10, 9  ;;  %v787_v29 = vrot.slane %v3095_v5, 5  ;;  %v254_v9 = vld [vmem:[%s3088_s17 + $0x74] sm:$0x1] }
  0x4d   : > { %2505 = vmatmul.mubr.msk.bf16.vlgmr.msra.gmra.mrb[0].mxu1 %vm485_vm3, %v3342_v45  ;;  %v3413_v62 = vcombine.low %v3265_v50, %v3270_v59  ;;  %v3422_v4 = vcombine.low %v823_v17, %v826_v21  ;;  %v831_v30 = vrot.slane %v829_v43, 4  ;;  %v1560_v35 = vshrl.u32 %v3416_v16, 16 }
  0x4e   : > { %2508 = vmatprep.mubr.msk.bf16.mxu1 %vm485_vm3, %v3352_v57  ;;  %2521 = vmatpush3.bf16.msra.mxu1 %v3166_v8  ;;  %v3407_v8 = vcombine.low %v816_v20, %v819_v2  ;;  %v1563_v5 = vshll.u32 %v3416_v16, 16  ;;  %v836_v25 = vrot.slane %v3246_v23, 5  ;;  %v788_v38 = vsel %vm3297_vm6, %v2274_v22, %v787_v29 }
  0x4f   : > { %2538 = vmatprep.subr.bf16.mxu1 %v3367_v32  ;;  %v789_v40 = vrot.slane %v787_v29, 4  ;;  %v1562_v41 = vrot.slane %v1560_v35, 4  ;;  %v1569_v46 = vshll.u32 %v3425_v31, 16  ;;  %v1579_v48 = vshll.u32 %v254_v9, 16 }
  0x50   : > { %2577 = vmatmul.mubr.msk.bf16.vlgmr.msra.gmra.mrb[0].mxu0 %vm485_vm3, %v3369_v0  ;;  %v1565_v42 = vrot.slane %v1563_v5, 5  ;;  %v2362_v51 = vrot.slane %v3416_v16, 9  ;;  %v1714_v53 = vrot.slane %v3425_v31, 5  ;;  %v839_v52 = vrot.slane %v3261_v47, 5 }
  0x51   : > { %2593 = vmatpush3.bf16.msra.mxu0 %v3203_v44  ;;  %2580 = vmatprep.mubr.msk.bf16.mxu0 %vm485_vm3, %v3373_v7  ;;  %v1573_v44 = vshrl.u32 %v3425_v31, 16  ;;  %v791_v11 = vsel %vm3297_vm6, %v789_v40, %v790_v12  ;;  %v1571_v27 = vrot.slane %v1569_v46, 5  ;;  %v838_v20 = vrot.slane %v836_v25, 4 }
  0x52   : > { %2610 = vmatprep.subr.bf16.mxu0 %v3395_v6  ;;  %v2284_v58 = vcombine.low %v788_v38, %v791_v11  ;;  %v1566_v61 = vor.u32 %v1565_v42, %v1562_v41  ;;  %v3446_v2 = vsel %vm3297_vm6, %v2362_v51, %v1714_v53  ;;  %v1716_v12 = vrot.slane %v1714_v53, 4 }
  0x53   : > { %v1575_v13 = vrot.slane %v1573_v44, 4  ;;  %v1717_v17 = vrot.slane %v254_v9, 5  ;;  %v1581_v29 = vrot.slane %v1579_v48, 5  ;;  %v2262_v47 = vcombine.low %v3186_v33, %v3193_v39 }
  0x54   : > { %v1567_v21 = vrot.slane %v1566_v61, 4  ;;  %v830_v35 = vsel %vm3297_vm6, %v2280_v49, %v829_v43  ;;  %v1296_v5 = vrot.slane %v3270_v59, 5  ;;  %v833_v9 = vsel %vm3297_vm6, %v831_v30, %v832_v54 }
  0x55   : > { %2509 = vmatmul.mubr.msk.bf16.gmra.mrb[4].mxu1 %vm485_vm3, %v3385_v15  ;;  %v1576_v22 = vor.u32 %v1575_v13, %v1571_v27  ;;  %v3457_v38 = vsel %vm3297_vm6, %v1716_v12, %v1717_v17  ;;  %v2263_v39 = vcombine.low %v3215_v55, %v3218_v56  ;;  %v837_v59 = vsel %vm3297_vm6, %v2281_v26, %v836_v25 }
  0x56   : > { %2512 = vmatprep.mubr.msk.bf16.mxu1 %vm485_vm3, %v3399_v1  ;;  %v1572_v40 = vsel %vm3124_vm2, %v1567_v21, %v1571_v27  ;;  %v2365_v33 = vcombine.low %v3446_v2, %v3457_v38  ;;  %v840_v43 = vsel %vm3297_vm6, %v838_v20, %v839_v52  ;;  %v2290_v54 = vcombine.low %v830_v35, %v833_v9 }
  0x57   : > { %v1577_v44 = vrot.slane %v1576_v22, 4  ;;  %v2291_v41 = vcombine.low %v837_v59, %v840_v43  ;;  %v2325_v42 = vrot.slane %v3265_v50, 9  ;;  %v1298_v46 = vrot.slane %v1296_v5, 4 }
  0x58   : > { %2581 = vmatmul.mubr.msk.bf16.gmra.mrb[4].mxu0 %vm485_vm3, %v3407_v8  ;;  %v1299_v48 = vrot.slane %v3284_v19, 5  ;;  %v2264_v28 = vcombine.low %v3230_v10, %v3246_v23  ;;  %v2854_v10 = vld [vmem:[%s3808_s1 + $0x40] sm:$0xff]   ;;  %v2340_v23 = vcombine.low %v3416_v16, %v3425_v31 }
  0x59   : > { %2584 = vmatprep.mubr.msk.bf16.mxu0 %vm485_vm3, %v3422_v4  ;;  %v1582_v49 = vsel %vm3124_vm2, %v1577_v44, %v1581_v29  ;;  %v1297_v55 = vsel %vm3297_vm6, %v2325_v42, %v1296_v5 }
  0x5a   : > { %v2352_v30 = vcombine.low %v1572_v40, %v1582_v49  ;;  %v1300_v56 = vsel %vm3297_vm6, %v1298_v46, %v1299_v48 }
  0x5b   : > { %v2328_v26 = vcombine.low %v1297_v55, %v1300_v56 }
  0x5d   : > { %2513 = vmatmul.mubr.msk.bf16.gmra.mrb[8].mxu1 %vm485_vm3, %v2262_v47 }
  0x5e   : > { %2516 = vmatprep.mubr.msk.bf16.mxu1 %vm485_vm3, %v2263_v39 }
  0x60   : > { %2585 = vmatmul.mubr.msk.bf16.gmra.mrb[8].mxu0 %vm485_vm3, %v2290_v54 }
  0x61   : > { %2588 = vmatprep.mubr.msk.bf16.mxu0 %vm485_vm3, %v2291_v41 }
  0x65   : > { %2517 = vmatmul.mubr.msk.bf16.gmra.mrb[12].mxu1 %vm485_vm3, %v2264_v28 }
  0x66   : > { %2522 = vmatprep.mubr.msk.bf16.mxu1 %vm485_vm3, %v2284_v58 }
  0x68   : > { %2589 = vmatmul.mubr.msk.bf16.gmra.mrb[12].mxu0 %vm485_vm3, %v2328_v26 }
  0x69   : > { %2594 = vmatprep.mubr.msk.bf16.mxu0 %vm485_vm3, %v3352_v57 }
  0x6d   : > { %2523 = vmatmul.mubr.msk.bf16.vlgmr.msra.gmra.mrb[0].mxu1 %vm485_vm3, %v3331_v36 }
  0x6e   : > { %2526 = vmatprep.mubr.msk.bf16.mxu1 %vm485_vm3, %v3369_v0  ;;  %2539 = vmatpush3.bf16.msra.mxu1 %v3367_v32 }
  0x70   : > { %2595 = vmatmul.mubr.msk.bf16.vlgmr.msra.gmra.mrb[0].mxu0 %vm485_vm3, %v3385_v15 }
  0x71   : > { %2611 = vmatpush3.bf16.msra.mxu0 %v3395_v6  ;;  %2598 = vmatprep.mubr.msk.bf16.mxu0 %vm485_vm3, %v3399_v1 }
  0x72   : > { %2628 = vmatprep.subr.bf16.mxu0 %v2854_v10 }
  0x75   : > { %2527 = vmatmul.mubr.msk.bf16.gmra.mrb[4].mxu1 %vm485_vm3, %v3373_v7 }
  0x76   : > { %2530 = vmatprep.mubr.msk.bf16.mxu1 %vm485_vm3, %v3407_v8 }
  0x78   : > { %2599 = vmatmul.mubr.msk.bf16.gmra.mrb[4].mxu0 %vm485_vm3, %v2262_v47 }
  0x79   : > { %2602 = vmatprep.mubr.msk.bf16.mxu0 %vm485_vm3, %v2263_v39 }
  0x7d   : > { %2531 = vmatmul.mubr.msk.bf16.gmra.mrb[8].mxu1 %vm485_vm3, %v3422_v4 }
  0x7e   : > { %2534 = vmatprep.mubr.msk.bf16.mxu1 %vm485_vm3, %v2290_v54 }
  0x80   : > { %2603 = vmatmul.mubr.msk.bf16.gmra.mrb[8].mxu0 %vm485_vm3, %v2264_v28 }
  0x81   : > { %2606 = vmatprep.mubr.msk.bf16.mxu0 %vm485_vm3, %v3413_v62 }
  0x85   : > { %2535 = vmatmul.mubr.msk.bf16.gmra.mrb[12].mxu1 %vm485_vm3, %v2291_v41 }
  0x86   : > { %2540 = vmatprep.mubr.msk.bf16.mxu1 %vm485_vm3, %v3342_v45 }
  0x88   : > { %2607 = vmatmul.mubr.msk.bf16.gmra.mrb[12].mxu0 %vm485_vm3, %v2340_v23 }
  0x89   : > { %2612 = vmatprep.mubr.msk.bf16.mxu0 %vm485_vm3, %v3195_v3  ;;  %v2855_v3 = vld [vmem:[%s3810_s3] sm:$0xff]  }
  0x8a   : > { %2646 = vmatprep.subr.bf16.mxu1 %v2855_v3 }
  0x8d   : > { %2541 = vmatmul.mubr.msk.bf16.vlgmr.msra.gmra.mrb[0].mxu1 %vm485_vm3, %v3352_v57 }
  0x8e   : > { %2544 = vmatprep.mubr.msk.bf16.mxu1 %vm485_vm3, %v3385_v15  ;;  %2647 = vmatpush3.bf16.msra.mxu1 %v2855_v3 }
  0x90   : > { %2613 = vmatmul.mubr.msk.bf16.vlgmr.msra.gmra.mrb[0].mxu0 %vm485_vm3, %v3224_v63  ;;  %v2856_v63 = vld [vmem:[%s3810_s3 + $0x8] sm:$0xff]  }
  0x91   : > { %2629 = vmatpush3.bf16.msra.mxu0 %v2854_v10  ;;  %2616 = vmatprep.mubr.msk.bf16.mxu0 %vm485_vm3, %v3248_v24 }
  0x92   : > { %2648 = vmatprep.subr.bf16.mxu1 %v2856_v63 }
  0x93   : > { %2649 = vmatpush3.bf16.msra.mxu1 %v2856_v63 }
  0x95   : > { %2545 = vmatmul.mubr.msk.bf16.gmra.mrb[4].mxu1 %vm485_vm3, %v3399_v1 }
  0x96   : > { %2548 = vmatprep.mubr.msk.bf16.mxu1 %vm485_vm3, %v2262_v47 }
  0x98   : > { %2617 = vmatmul.mubr.msk.bf16.gmra.mrb[4].mxu0 %vm485_vm3, %v3272_v60 }
  0x99   : > { %2620 = vmatprep.mubr.msk.bf16.mxu0 %vm485_vm3, %v3292_v34 }
  0x9d   : > { %2549 = vmatmul.mubr.msk.bf16.gmra.mrb[8].mxu1 %vm485_vm3, %v2263_v39 }
  0x9e   : > { %2552 = vmatprep.mubr.msk.bf16.mxu1 %vm485_vm3, %v2264_v28 }
  0xa0   : > { %2621 = vmatmul.mubr.msk.bf16.gmra.mrb[8].mxu0 %vm485_vm3, %v3316_v18 }
  0xa1   : > { %2624 = vmatprep.mubr.msk.bf16.mxu0 %vm485_vm3, %v3334_v37 }
  0xa5   : > { %2553 = vmatmul.mubr.msk.bf16.gmra.mrb[12].mxu1 %vm485_vm3, %v3413_v62 }
  0xa8   : > { %2625 = vmatmul.mubr.msk.bf16.gmra.mrb[12].mxu0 %vm485_vm3, %v2352_v30 }
  0xa9   : > { %2630 = vmatprep.mubr.msk.bf16.mxu0 %vm485_vm3, %v3369_v0 }
  0xb0   : > { %2631 = vmatmul.mubr.msk.bf16.vlgmr.msra.gmra.mrb[0].mxu0 %vm485_vm3, %v3373_v7 }
  0xb1   : > { %2634 = vmatprep.mubr.msk.bf16.mxu0 %vm485_vm3, %v3407_v8  ;;  %v3581_v8 = vld [vmem:[%s3809_s2] ss:$0 sm:$0xff] }
  0xb8   : > { %2635 = vmatmul.mubr.msk.bf16.gmra.mrb[4].mxu0 %vm485_vm3, %v3422_v4 }
  0xb9   : > { %2638 = vmatprep.mubr.msk.bf16.mxu0 %vm485_vm3, %v2290_v54 }
  0xc0   : > { %2639 = vmatmul.mubr.msk.bf16.gmra.mrb[8].mxu0 %vm485_vm3, %v2291_v41 }
  0xc1   : > { %2642 = vmatprep.mubr.msk.bf16.mxu0 %vm485_vm3, %v2328_v26 }
  0xc8   : > { %2643 = vmatmul.mubr.msk.bf16.gmra.mrb[12].mxu0 %vm485_vm3, %v2365_v33 }
 0x160   : > { %v2542_v24 = vpop.f32.mrb[0].mxu1 }
 0x161   : > { %v1062_v50 = vpop.f32.mrb[1].mxu1 }
 0x162   : > { %v2543_v60 = vpop.f32.mrb[2].mxu1 }
 0x163   : > { %v1065_v19 = vpop.f32.mrb[3].mxu1 }
 0x168   : > { %v2546_v34 = vpop.f32.mrb[4].mxu1 }
 0x169   : > { %v1078_v14 = vpop.f32.mrb[5].mxu1 }
 0x16a   : > { %v2547_v18 = vpop.f32.mrb[6].mxu1 }
 0x16b   : > { %v1081_v36 = vpop.f32.mrb[7].mxu1 }
 0x170   : > { %v2550_v37 = vpop.f32.mrb[8].mxu1 }
 0x171   : > { %v1094_v45 = vpop.f32.mrb[9].mxu1 }
 0x172   : > { %v2551_v57 = vpop.f32.mrb[10].mxu1 }
 0x173   : > { %v1097_v32 = vpop.f32.mrb[11].mxu1 }
 0x178   : > { %v3570_v0 = vpop.f32.mrb[12].mxu1 }
 0x179   : > { %v3572_v7 = vpop.f32.mrb[13].mxu1 }
 0x17a   : > { %v3574_v15 = vpop.f32.mrb[14].mxu1 }
 0x17b   : > { %v3576_v6 = vpop.f32.mrb[15].mxu1 }
 0x183   : > { %v2632_v1 = vpop.f32.mrb[0].mxu0 }
 0x184   : > { %v2666_v62 = vadd.f32 %v2632_v1, %v2542_v24  ;;  %v1768_v16 = vpop.f32.mrb[1].mxu0 }
 0x185   : > { %v2667_v4 = vadd.f32 %v1768_v16, %v1062_v50  ;;  %v2633_v31 = vpop.f32.mrb[2].mxu0 }
 0x186   : > { %v1856_v25 = vadd.f32 %v2666_v62, %v3581_v8  ;;  %v2668_v11 = vadd.f32 %v2633_v31, %v2543_v60  ;;  %v1771_v13 = vpop.f32.mrb[3].mxu0 }
 0x187   : > { %v1854_v51 = vadd.f32 %v2667_v4, %v3581_v8  ;;  %v2669_v53 = vadd.f32 %v1771_v13, %v1065_v19 }
 0x188   : > { %v1857_v52 = vadd.f32 %v2668_v11, %v3581_v8  ;;  %v1872_v61 = vmax.f32 %v1856_v25, 0.0 }
 0x189   : > { %v1855_v58 = vadd.f32 %v2669_v53, %v3581_v8  ;;  %v1870_v20 = vmax.f32 %v1854_v51, 0.0 }
 0x18a   : > { %v1873_v27 = vmax.f32 %v1857_v52, 0.0 }
 0x18b   : > { %v1871_v2 = vmax.f32 %v1855_v58, 0.0  ;;  %v2636_v12 = vpop.f32.mrb[4].mxu0 }
 0x18c   : > { %v1887_v17 = vpack.c.bf16 %v1873_v27, %v1872_v61  ;;  %v2670_v21 = vadd.f32 %v2636_v12, %v2546_v34  ;;  %v1784_v22 = vpop.f32.mrb[5].mxu0 }
 0x18d   : > { %v1886_v29 = vpack.c.bf16 %v1871_v2, %v1870_v20  ;;  %v2671_v47 = vadd.f32 %v1784_v22, %v1078_v14  ;;  %v2637_v35 = vpop.f32.mrb[6].mxu0 }
 0x18e   : > { %v1860_v5 = vadd.f32 %v2670_v21, %v3581_v8  ;;  %v2672_v38 = vadd.f32 %v2637_v35, %v2547_v18  ;;  %v1787_v9 = vpop.f32.mrb[7].mxu0 }
 0x18f   : > { %v1858_v40 = vadd.f32 %v2671_v47, %v3581_v8  ;;  %v2673_v44 = vadd.f32 %v1787_v9, %v1081_v36  ;;  %2650 = vmatprep.mubr.msk.bf16.mxu1 %vm1917_vm7, %v1886_v29 }
 0x190   : > { %v1861_v33 = vadd.f32 %v2672_v38, %v3581_v8  ;;  %2651 = vmatmul.mubr.msk.bf16.vlgmr.msra.gmra.mrb[16].mxu1 %vm1917_vm7, %v1887_v17  ;;  %v1876_v59 = vmax.f32 %v1860_v5, 0.0 }
 0x191   : > { %v1859_v39 = vadd.f32 %v2673_v44, %v3581_v8  ;;  %v1874_v49 = vmax.f32 %v1858_v40, 0.0 }
 0x192   : > { %v1877_v43 = vmax.f32 %v1861_v33, 0.0 }
 0x193   : > { %v1875_v54 = vmax.f32 %v1859_v39, 0.0  ;;  %v2640_v30 = vpop.f32.mrb[8].mxu0 }
 0x194   : > { %v1889_v41 = vpack.c.bf16 %v1877_v43, %v1876_v59  ;;  %v2674_v42 = vadd.f32 %v2640_v30, %v2550_v37  ;;  %v1800_v46 = vpop.f32.mrb[9].mxu0 }
 0x195   : > { %v1888_v48 = vpack.c.bf16 %v1875_v54, %v1874_v49  ;;  %v2675_v28 = vadd.f32 %v1800_v46, %v1094_v45  ;;  %v2641_v55 = vpop.f32.mrb[10].mxu0 }
 0x196   : > { %v1864_v56 = vadd.f32 %v2674_v42, %v3581_v8  ;;  %v2676_v26 = vadd.f32 %v2641_v55, %v2551_v57  ;;  %v1803_v10 = vpop.f32.mrb[11].mxu0 }
 0x197   : > { %v1862_v23 = vadd.f32 %v2675_v28, %v3581_v8  ;;  %v2677_v3 = vadd.f32 %v1803_v10, %v1097_v32  ;;  %2654 = vmatprep.mubr.msk.bf16.mxu1 %vm1917_vm7, %v1888_v48  ;;  %v2119_v28 = vlaneseq }
 0x198   : > { %v1865_v63 = vadd.f32 %v2676_v26, %v3581_v8  ;;  %2655 = vmatmul.mubr.msk.bf16.gmra.mrb[20].mxu1 %vm1917_vm7, %v1889_v41  ;;  %v1880_v50 = vmax.f32 %v1864_v56, 0.0 }
 0x199   : > { %v1863_v24 = vadd.f32 %v2677_v3, %v3581_v8  ;;  %v1878_v19 = vmax.f32 %v1862_v23, 0.0 }
 0x19a   : > { %v1881_v60 = vmax.f32 %v1865_v63, 0.0 }
 0x19b   : > { %v1879_v34 = vmax.f32 %v1863_v24, 0.0  ;;  %v2644_v14 = vpop.f32.mrb[12].mxu0 }
 0x19c   : > { %v1891_v18 = vpack.c.bf16 %v1881_v60, %v1880_v50  ;;  %v2678_v36 = vadd.f32 %v2644_v14, %v3570_v0  ;;  %v1816_v37 = vpop.f32.mrb[13].mxu0 }
 0x19d   : > { %v1890_v45 = vpack.c.bf16 %v1879_v34, %v1878_v19  ;;  %v2679_v57 = vadd.f32 %v1816_v37, %v3572_v7  ;;  %v2645_v32 = vpop.f32.mrb[14].mxu0  ;;  %v2120_v34 = vand.u32 127, %v2119_v28 }
 0x19e   : > { %v1868_v1 = vadd.f32 %v2678_v36, %v3581_v8  ;;  %v2680_v62 = vadd.f32 %v2645_v32, %v3574_v15  ;;  %v1819_v16 = vpop.f32.mrb[15].mxu0  ;;  %v3614_v15 = vld [vmem:[%s3811_s4] ss:$0 sm:$0xff] }
 0x19f   : > { %v1866_v4 = vadd.f32 %v2679_v57, %v3581_v8  ;;  %v2681_v31 = vadd.f32 %v1819_v16, %v3576_v6  ;;  %2658 = vmatprep.mubr.msk.bf16.mxu1 %vm1917_vm7, %v1890_v45  ;;  %vm2121_vm8 = vcmp.ge.s32.totalorder %v2120_v34, 54  ;;  %vm2122_vm9 = vcmp.lt.s32.totalorder %v2120_v34, 63 }
 0x1a0   : > { %v1869_v25 = vadd.f32 %v2680_v62, %v3581_v8  ;;  %2659 = vmatmul.mubr.msk.bf16.gmra.mrb[24].mxu1 %vm1917_vm7, %v1891_v18  ;;  %v1884_v11 = vmax.f32 %v1868_v1, 0.0  ;;  %vm3679_vm10 = vmand %vm2121_vm8, %vm2122_vm9 }
 0x1a1   : > { %v1867_v0 = vadd.f32 %v2681_v31, %v3581_v8  ;;  %v1882_v13 = vmax.f32 %v1866_v4, 0.0 }
 0x1a2   : > { %v1885_v7 = vmax.f32 %v1869_v25, 0.0 }
 0x1a3   : > { %v1883_v51 = vmax.f32 %v1867_v0, 0.0 }
 0x1a4   : > { %v1893_v53 = vpack.c.bf16 %v1885_v7, %v1884_v11 }
 0x1a5   : > { %v1892_v52 = vpack.c.bf16 %v1883_v51, %v1882_v13 }
 0x1a7   : > { %2662 = vmatprep.mubr.msk.bf16.mxu1 %vm1917_vm7, %v1892_v52 }
 0x1a8   : > { %2663 = vmatmul.mubr.msk.bf16.gmra.mrb[28].mxu1 %vm1917_vm7, %v1893_v53 }
 0x263   : > { %v2652_v6 = vpop.f32.mrb[16].mxu1 }
 0x264   : > { %v3617_v58 = vadd.f32 %v2652_v6, %v3614_v15  ;;  %v1976_v8 = vpop.f32.mrb[17].mxu1 }
 0x265   : > { %v3620_v61 = vadd.f32 %v3614_v15, %v1976_v8  ;;  %v2653_v27 = vpop.f32.mrb[18].mxu1 }
 0x266   : > { %v2041_v20 = vsub.f32 0.0, %v3617_v58  ;;  %v3624_v2 = vadd.f32 %v2653_v27, %v3614_v15  ;;  %v1979_v12 = vpop.f32.mrb[19].mxu1 }
 0x267   : > { %v2039_v17 = vsub.f32 0.0, %v3620_v61  ;;  %v3628_v21 = vadd.f32 %v3614_v15, %v1979_v12 }
 0x268   : > { %v2059_v22 = vmul.f32 1.442695, %v2041_v20  ;;  %v2042_v29 = vsub.f32 0.0, %v3624_v2 }
 0x269   : > { %v2055_v47 = vmul.f32 1.442695, %v2039_v17  ;;  %v2040_v35 = vsub.f32 0.0, %v3628_v21 }
 0x26a   : > { %2857 = vpow2.f32 %v2059_v22  ;;  %v2061_v5 = vmul.f32 1.442695, %v2042_v29 }
 0x26b   : > { %2859 = vpow2.f32 %v2055_v47  ;;  %v2057_v38 = vmul.f32 1.442695, %v2040_v35  ;;  %v2656_v9 = vpop.f32.mrb[20].mxu1 }
 0x26c   : > { %2861 = vpow2.f32 %v2061_v5  ;;  %v3633_v40 = vadd.f32 %v2656_v9, %v3614_v15  ;;  %v1992_v44 = vpop.f32.mrb[21].mxu1 }
 0x26d   : > { %2863 = vpow2.f32 %v2057_v38  ;;  %v3636_v33 = vadd.f32 %v3614_v15, %v1992_v44  ;;  %v2657_v39 = vpop.f32.mrb[22].mxu1 }
 0x26e   : > { %v2045_v59 = vsub.f32 0.0, %v3633_v40  ;;  %v3640_v43 = vadd.f32 %v2657_v39, %v3614_v15  ;;  %v1995_v49 = vpop.f32.mrb[23].mxu1 }
 0x26f   : > { %v2043_v54 = vsub.f32 0.0, %v3636_v33  ;;  %v3644_v30 = vadd.f32 %v3614_v15, %v1995_v49 }
 0x270   : > { %v2067_v41 = vmul.f32 1.442695, %v2045_v59  ;;  %v2046_v42 = vsub.f32 0.0, %v3640_v43 }
 0x271   : > { %v2063_v46 = vmul.f32 1.442695, %v2043_v54  ;;  %v2044_v48 = vsub.f32 0.0, %v3644_v30 }
 0x272   : > { %2865 = vpow2.f32 %v2067_v41  ;;  %v2069_v55 = vmul.f32 1.442695, %v2046_v42 }
 0x273   : > { %2867 = vpow2.f32 %v2063_v46  ;;  %v2065_v56 = vmul.f32 1.442695, %v2044_v48  ;;  %v2660_v26 = vpop.f32.mrb[24].mxu1 }
 0x274   : > { %v2858_v10 = vpop.eup %2857  ;;  %2869 = vpow2.f32 %v2069_v55  ;;  %v3649_v23 = vadd.f32 %v2660_v26, %v3614_v15  ;;  %v2008_v3 = vpop.f32.mrb[25].mxu1 }
 0x275   : > { %v2860_v63 = vpop.eup %2859  ;;  %v2089_v24 = vadd.f32 1.0, %v2858_v10  ;;  %2871 = vpow2.f32 %v2065_v56  ;;  %v3652_v50 = vadd.f32 %v3614_v15, %v2008_v3  ;;  %v2661_v60 = vpop.f32.mrb[26].mxu1 }
 0x276   : > { %v2862_v19 = vpop.eup %2861  ;;  %v2087_v14 = vadd.f32 1.0, %v2860_v63  ;;  %v2049_v18 = vsub.f32 0.0, %v3649_v23  ;;  %v3656_v36 = vadd.f32 %v2661_v60, %v3614_v15  ;;  %v2011_v37 = vpop.f32.mrb[27].mxu1 }
 0x277   : > { %v2864_v45 = vpop.eup %2863  ;;  %2873 = vrcp.f32 %v2089_v24  ;;  %v2090_v57 = vadd.f32 1.0, %v2862_v19  ;;  %v2047_v32 = vsub.f32 0.0, %v3652_v50  ;;  %v3660_v1 = vadd.f32 %v3614_v15, %v2011_v37 }
 0x278   : > { %2875 = vrcp.f32 %v2087_v14  ;;  %v2088_v62 = vadd.f32 1.0, %v2864_v45  ;;  %v2075_v16 = vmul.f32 1.442695, %v2049_v18  ;;  %v2050_v4 = vsub.f32 0.0, %v3656_v36 }
 0x279   : > { %2877 = vrcp.f32 %v2090_v57  ;;  %v2071_v31 = vmul.f32 1.442695, %v2047_v32  ;;  %v2048_v25 = vsub.f32 0.0, %v3660_v1 }
 0x27a   : > { %2879 = vrcp.f32 %v2088_v62  ;;  %v2077_v0 = vmul.f32 1.442695, %v2050_v4 }
 0x27b   : > { %2881 = vpow2.f32 %v2075_v16  ;;  %v2073_v11 = vmul.f32 1.442695, %v2048_v25  ;;  %v2664_v7 = vpop.f32.mrb[28].mxu1 }
 0x27c   : > { %v2866_v13 = vpop.eup %2865  ;;  %2883 = vpow2.f32 %v2071_v31  ;;  %v3666_v51 = vadd.f32 %v2664_v7, %v3614_v15  ;;  %v2024_v53 = vpop.f32.mrb[29].mxu1 }
 0x27d   : > { %v2868_v52 = vpop.eup %2867  ;;  %v2093_v6 = vadd.f32 1.0, %v2866_v13  ;;  %2885 = vpow2.f32 %v2077_v0  ;;  %v3671_v8 = vadd.f32 %v3614_v15, %v2024_v53  ;;  %v2665_v27 = vpop.f32.mrb[30].mxu1 }
 0x27e   : > { %v2870_v20 = vpop.eup %2869  ;;  %v2091_v12 = vadd.f32 1.0, %v2868_v52  ;;  %2887 = vpow2.f32 %v2073_v11  ;;  %v2053_v17 = vsub.f32 0.0, %v3666_v51  ;;  %v3675_v22 = vadd.f32 %v2665_v27, %v3614_v15  ;;  %v2027_v29 = vpop.f32.mrb[31].mxu1 }
 0x27f   : > { %v2872_v47 = vpop.eup %2871  ;;  %2889 = vrcp.f32 %v2093_v6  ;;  %v2094_v5 = vadd.f32 1.0, %v2870_v20  ;;  %v2051_v38 = vsub.f32 0.0, %v3671_v8  ;;  %v3685_v9 = vadd.f32 %v3614_v15, %v2027_v29 }
 0x280   : > { %2891 = vrcp.f32 %v2091_v12  ;;  %v2092_v44 = vadd.f32 1.0, %v2872_v47  ;;  %v2083_v39 = vmul.f32 1.442695, %v2053_v17  ;;  %v2054_v59 = vsub.f32 0.0, %v3675_v22 }
 0x281   : > { %v2874_v49 = vpop.eup %2873  ;;  %2893 = vrcp.f32 %v2094_v5  ;;  %v2079_v54 = vmul.f32 1.442695, %v2051_v38  ;;  %v2052_v41 = vsub.f32 0.0, %v3685_v9 }
 0x282   : > { %v2876_v42 = vpop.eup %2875  ;;  %v2126_v46 = vsel %vm3679_vm10, %v2874_v49, %v3617_v58  ;;  %2895 = vrcp.f32 %v2092_v44  ;;  %v2085_v48 = vmul.f32 1.442695, %v2054_v59 }
 0x283   : > { %v2878_v28 = vpop.eup %2877  ;;  %2142 = vst [vmem:[%s3692_s6 + $0x10] sm:$0xff] %v2126_v46  ;;  %v2124_v15 = vsel %vm3679_vm10, %v2876_v42, %v3620_v61  ;;  %2897 = vpow2.f32 %v2083_v39  ;;  %v2081_v55 = vmul.f32 1.442695, %v2052_v41 }
 0x284   : > { %v2880_v56 = vpop.eup %2879  ;;  %2140 = vst [vmem:[%s3692_s6] sm:$0xff] %v2124_v15  ;;  %v2127_v58 = vsel %vm3679_vm10, %v2878_v28, %v3624_v2  ;;  %2899 = vpow2.f32 %v2079_v54 }
 0x285   : > { %v2882_v26 = vpop.eup %2881  ;;  %2143 = vst [vmem:[%s3692_s6 + $0x18] sm:$0xff] %v2127_v58  ;;  %v2125_v10 = vsel %vm3679_vm10, %v2880_v56, %v3628_v21  ;;  %2901 = vpow2.f32 %v2085_v48 }
 0x286   : > { %v2884_v3 = vpop.eup %2883  ;;  %2141 = vst [vmem:[%s3692_s6 + $0x8] sm:$0xff] %v2125_v10  ;;  %v2097_v61 = vadd.f32 1.0, %v2882_v26  ;;  %2903 = vpow2.f32 %v2081_v55 }
 0x287   : > { %v2886_v63 = vpop.eup %2885  ;;  %v2095_v24 = vadd.f32 1.0, %v2884_v3 }
 0x288   : > { %v2888_v60 = vpop.eup %2887  ;;  %2905 = vrcp.f32 %v2097_v61  ;;  %v2098_v2 = vadd.f32 1.0, %v2886_v63 }
 0x289   : > { %v2890_v19 = vpop.eup %2889  ;;  %2907 = vrcp.f32 %v2095_v24  ;;  %v2096_v34 = vadd.f32 1.0, %v2888_v60 }
 0x28a   : > { %v2892_v14 = vpop.eup %2891  ;;  %v2130_v21 = vsel %vm3679_vm10, %v2890_v19, %v3633_v40  ;;  %2909 = vrcp.f32 %v2098_v2 }
 0x28b   : > { %v2894_v18 = vpop.eup %2893  ;;  %2146 = vst [vmem:[%s3692_s6 + $0x30] sm:$0xff] %v2130_v21  ;;  %v2128_v37 = vsel %vm3679_vm10, %v2892_v14, %v3636_v33  ;;  %2911 = vrcp.f32 %v2096_v34 }
 0x28c   : > { %v2896_v45 = vpop.eup %2895  ;;  %2144 = vst [vmem:[%s3692_s6 + $0x20] sm:$0xff] %v2128_v37  ;;  %v2131_v57 = vsel %vm3679_vm10, %v2894_v18, %v3640_v43 }
 0x28d   : > { %v2898_v32 = vpop.eup %2897  ;;  %2147 = vst [vmem:[%s3692_s6 + $0x38] sm:$0xff] %v2131_v57  ;;  %v2129_v40 = vsel %vm3679_vm10, %v2896_v45, %v3644_v30 }
 0x28e   : > { %v2900_v62 = vpop.eup %2899  ;;  %2145 = vst [vmem:[%s3692_s6 + $0x28] sm:$0xff] %v2129_v40  ;;  %v2101_v16 = vadd.f32 1.0, %v2898_v32 }
 0x28f   : > { %v2902_v4 = vpop.eup %2901  ;;  %v2099_v33 = vadd.f32 1.0, %v2900_v62 }
 0x290   : > { %v2904_v31 = vpop.eup %2903  ;;  %2913 = vrcp.f32 %v2101_v16  ;;  %v2102_v25 = vadd.f32 1.0, %v2902_v4 }
 0x291   : > { %2915 = vrcp.f32 %v2099_v33  ;;  %v2100_v43 = vadd.f32 1.0, %v2904_v31 }
 0x292   : > { %v2906_v0 = vpop.eup %2905  ;;  %2917 = vrcp.f32 %v2102_v25 }
 0x293   : > { %v2908_v11 = vpop.eup %2907  ;;  %v2134_v30 = vsel %vm3679_vm10, %v2906_v0, %v3649_v23  ;;  %2919 = vrcp.f32 %v2100_v43 }
 0x294   : > { %v2910_v7 = vpop.eup %2909  ;;  %2150 = vst [vmem:[%s3692_s6 + $0x50] sm:$0xff] %v2134_v30  ;;  %v2132_v13 = vsel %vm3679_vm10, %v2908_v11, %v3652_v50 }
 0x295   : > { %v2912_v53 = vpop.eup %2911  ;;  %2148 = vst [vmem:[%s3692_s6 + $0x40] sm:$0xff] %v2132_v13  ;;  %v2135_v52 = vsel %vm3679_vm10, %v2910_v7, %v3656_v36 }
 0x296   : > { %2151 = vst [vmem:[%s3692_s6 + $0x58] sm:$0xff] %v2135_v52  ;;  %v2133_v23 = vsel %vm3679_vm10, %v2912_v53, %v3660_v1 }
 0x297   : > { %2149 = vst [vmem:[%s3692_s6 + $0x48] sm:$0xff] %v2133_v23 }
 0x29a   : > { %v2914_v6 = vpop.eup %2913 }
 0x29b   : > { %v2916_v50 = vpop.eup %2915  ;;  %v2138_v27 = vsel %vm3679_vm10, %v2914_v6, %v3666_v51 }
 0x29c   : > { %v2918_v20 = vpop.eup %2917  ;;  %2154 = vst [vmem:[%s3692_s6 + $0x70] sm:$0xff] %v2138_v27  ;;  %v2136_v36 = vsel %vm3679_vm10, %v2916_v50, %v3671_v8 }
 0x29d   : > { %v2920_v1 = vpop.eup %2919  ;;  %2152 = vst [vmem:[%s3692_s6 + $0x60] sm:$0xff] %v2136_v36  ;;  %v2139_v51 = vsel %vm3679_vm10, %v2918_v20, %v3675_v22 }
 0x29e   : > { %2155 = vst [vmem:[%s3692_s6 + $0x78] sm:$0xff] %v2139_v51  ;;  %v2137_v8 = vsel %vm3679_vm10, %v2920_v1, %v3685_v9 }
 0x29f   : > { %2153 = vst [vmem:[%s3692_s6 + $0x68] sm:$0xff] %v2137_v8 }
 0x2a0   : > { %2934 = shalt.err (!%p2931_p3)
}
 0x2a1   : > { %s2935_s16 = scalar_lea.hbm %s3751_s11, 2048  ;;  %s2939_s25 = scalar_lea.hbm %s3812_s5, 8192 }
 0x2a2   : > { %p2936_p4 = scmp.ne.s32.totalorder %s3751_s11, %s2935_s16  ;;  %p2940_p9 = scmp.lt.u32.totalorder %s3751_s11, %s3812_s5 }
 0x2a3   : > { %p2941_p10 = scmp.lt.u32.totalorder %s2939_s25, %s2935_s16  ;;  %p2943_p12 = scmp.lt.u32.totalorder %s2935_s16, %s3751_s11 }
 0x2a4   : > { %p2937_p7 = pnand %p2936_p4, %p3056_p5 }
 0x2a5   : > { %p2942_p11 = por %p2941_p10, %p2940_p9 }
 0x2a6   : > { %p2938_p8 = pneg %p2937_p7 }
 0x2a7   : > { %p2944_p13 = por %p2943_p12, %p2942_p11 }
 0x2a9   : > { %p2945_p0 = pnand %p2944_p13, %p2938_p8 }
 0x2ab   : > { %2948 = shalt.err (!%p2945_p0)
}
 0x2ac   : > { %s2986_s6 = smov 128   ;;  %s2987_s7 = smov 8  }
 0x2ad   : > { %2795 = dma.vmem_to_hbm [thread:$0]  (%p3056_p5), %s3753_s8, 2048, %s3751_s11, %s3766_s22, %s2986_s6, %s2986_s6, %s2987_s7  }
 0x2ae PF: > { %p2801_p1 = scmp.ge.s32.totalorder %s2983_s21, 2  ;;  %s2185_s9 = sand.u32 1, %s2971_s18  }
 0x2af   : > { %s2186_s10 = scalar_lea.sflag [#allocation3], %s2185_s9 }
 0x2b0   : > { %p2798_p2 = pnand %p2801_p1, %p3060_p6 }
 0x2b2   : > { %2966 = dma.done.wait (!%p2798_p2), %s2186_s10, 2048  }
 0x2b3   : > { %2968 = vsyncadd (!%p2798_p2), %s2186_s10, 4294965248  ;;  %p15_p3 = scmp.ge.s32.totalorder %s3043_s24, 6   ;;  %s3821_s18 = smov %s2975_s19 }
 0x2b4   : > { %s3822_s19 = smov %s2979_s20  ;;  %s3823_s20 = smov %s3054_s27 }
 0x2b5   : > { %s3824_s21 = smov %s3043_s24  ;;  %17 = sbr.rel (!%p15_p3) target bundleno = 3 (0x3), region = 83 }
 0x2bc   :  { %2191 = vsyncpa [#allocation3], 1 }
 0x2bd   :  { %2193 = vsyncpa [#allocation3 + $0x1], 1 }

</bundles_post_ra>
